<compile_context>
chip_gen: v6e
topology: v6e:2x2x1
jax: 0.10.0
libtpu: 0.0.40
codegen_flags: <defaults>
</compile_context>

<pallas_src>
import math
import functools

import jax
import jax.numpy as jnp
from jax.experimental import pallas as pl
from jax.experimental.pallas import tpu as pltpu


MATMUL_DTYPE = jnp.bfloat16   # MXU input dtype (accumulation is always f32)
LN_EPS = 1e-6
MASK_NEG = -1e9
VMEM_LIMIT = 64 * 1024 * 1024


# --------------------------- fused sub-layer kernels ------------------------

def _mha_sublayer_kernel(*args, num_heads, mask_mode):
    """Fused: Q/(K|V) projections -> MHA -> out proj -> residual -> LayerNorm.

    One grid step == one batch element; all intermediates stay in VMEM.
    mask_mode: "causal" (in-kernel iota mask), "none", or "dense" (mask input).
    """
    if mask_mode == "dense":
        (q_in_ref, kv_in_ref, mask_ref,
         wq_ref, bq_ref, wkv_ref, bkv_ref, wo_ref, bo_ref,
         g_ref, b_ref, out_ref, ctx_ref) = args
    else:
        (q_in_ref, kv_in_ref,
         wq_ref, bq_ref, wkv_ref, bkv_ref, wo_ref, bo_ref,
         g_ref, b_ref, out_ref, ctx_ref) = args
        mask_ref = None

    x = q_in_ref[0]        # (Sq, E) f32 query input (also the residual)
    src = kv_in_ref[0]     # (Sk, E) f32 key/value input

    sq, emb = x.shape
    sk = src.shape[0]
    dk = emb // num_heads
    scale = 1.0 / math.sqrt(dk)

    # Fused projections (bf16 on the MXU, f32 accumulation), then cast the
    # activations to bf16 ONCE so the attention matmuls also run at bf16 rate.
    q = (jnp.dot(x.astype(MATMUL_DTYPE), wq_ref[...],
                 preferred_element_type=jnp.float32)
         + bq_ref[...]).astype(MATMUL_DTYPE)                          # (Sq, E)
    kv = jnp.dot(src.astype(MATMUL_DTYPE), wkv_ref[...],
                 preferred_element_type=jnp.float32) + bkv_ref[...]   # (Sk, 2E)
    k = kv[:, :emb].astype(MATMUL_DTYPE)
    v = kv[:, emb:].astype(MATMUL_DTYPE)

    # Mask (no HBM bias tensor): causal mask from iota, or dense fallback.
    if mask_mode == "causal":
        row = jax.lax.broadcasted_iota(jnp.int32, (sq, sk), 0)
        col = jax.lax.broadcasted_iota(jnp.int32, (sq, sk), 1)
        keep = row >= col
    elif mask_mode == "dense":
        keep = mask_ref[0] != 0
    else:
        keep = None

    # Per-head attention; each head's context lands in a static column slice
    # of the (Sq, E) VMEM scratch so the output projection is a single big
    # K=E matmul after the loop (no per-head Wo slices / weight casts).
    for h in range(num_heads):
        lo, hi = h * dk, (h + 1) * dk
        qh, kh, vh = q[:, lo:hi], k[:, lo:hi], v[:, lo:hi]
        # QK^T without materializing a transpose: contract dim 1 with dim 1.
        s = jax.lax.dot_general(qh, kh, (((1,), (1,)), ((), ())),
                                preferred_element_type=jnp.float32) * scale
        if keep is not None:
            s = jnp.where(keep, s, MASK_NEG)
        s = s - jnp.max(s, axis=-1, keepdims=True)
        p = jnp.exp(s)
        p = p * pl.reciprocal(jnp.sum(p, axis=-1, keepdims=True), approx=True)
        ctx_ref[:, lo:hi] = jnp.dot(p.astype(MATMUL_DTYPE), vh,
                                    preferred_element_type=jnp.float32)

    # Single output projection over the concatenated heads (bf16 Wo).
    o = jnp.dot(ctx_ref[...].astype(MATMUL_DTYPE), wo_ref[...],
                preferred_element_type=jnp.float32) + bo_ref[...]

    # residual + LayerNorm (post-norm, eps=1e-6), one-pass variance, f32 math.
    y = o + x
    mean = jnp.mean(y, axis=-1, keepdims=True)
    var = jnp.mean(y * y, axis=-1, keepdims=True) - mean * mean
    out_ref[0] = (y - mean) * jax.lax.rsqrt(var + LN_EPS) * g_ref[...] + b_ref[...]


def _ffn_sublayer_kernel(x_ref, w1_ref, b1_ref, w2_ref, b2_ref, g_ref, b_ref,
                         out_ref):
    """Fused: Linear(E->d_ff) -> ReLU -> Linear(d_ff->E) -> residual -> LN."""
    x = x_ref[...]                                                     # (tm, E)
    h1 = jnp.dot(x.astype(MATMUL_DTYPE), w1_ref[...],
                 preferred_element_type=jnp.float32) + b1_ref[...]
    h1 = jnp.maximum(h1, 0.0)
    h2 = jnp.dot(h1.astype(MATMUL_DTYPE), w2_ref[...],
                 preferred_element_type=jnp.float32) + b2_ref[...]
    y = h2 + x
    mean = jnp.mean(y, axis=-1, keepdims=True)
    var = jnp.mean(y * y, axis=-1, keepdims=True) - mean * mean
    out_ref[...] = (y - mean) * jax.lax.rsqrt(var + LN_EPS) * g_ref[...] + b_ref[...]


# ----------------------------- Pallas wrappers -------------------------------

def mha_sublayer(params, q_in, kv_in, num_heads, mask_mode="none", mask=None):
    """One fused pallas_call per attention sub-layer (self or cross)."""
    B, Sq, E = q_in.shape
    Sk = kv_in.shape[1]

    kernel = functools.partial(_mha_sublayer_kernel, num_heads=num_heads,
                               mask_mode=mask_mode)
    const = lambda b: (0, 0)

    in_specs = [
        pl.BlockSpec((1, Sq, E), lambda b: (b, 0, 0)),    # q_in / residual
        pl.BlockSpec((1, Sk, E), lambda b: (b, 0, 0)),    # kv_in
    ]
    inputs = [q_in, kv_in]
    if mask_mode == "dense":
        in_specs.append(pl.BlockSpec((1, Sq, Sk), lambda b: (b, 0, 0)))
        inputs.append(mask)
    in_specs += [
        pl.BlockSpec((E, E), const),                      # wq   (bf16)
        pl.BlockSpec((1, E), const),                      # bq
        pl.BlockSpec((E, 2 * E), const),                  # wkv  (bf16)
        pl.BlockSpec((1, 2 * E), const),                  # bkv
        pl.BlockSpec((E, E), const),                      # wo   (bf16)
        pl.BlockSpec((1, E), const),                      # bo
        pl.BlockSpec((1, E), const),                      # ln gamma
        pl.BlockSpec((1, E), const),                      # ln beta
    ]
    inputs += [params["wq"], params["bq"], params["wkv"], params["bkv"],
               params["wo"], params["bo"], params["ln_g"], params["ln_b"]]

    # TODO(synk): mark the constant-weight specs pipeline_mode=pl.Buffered(1)
    #             and tile Sq (flash-style) for production sizes on v7x.
    return pl.pallas_call(
        kernel,
        grid=(B,),
        out_shape=jax.ShapeDtypeStruct((B, Sq, E), jnp.float32),
        in_specs=in_specs,
        out_specs=pl.BlockSpec((1, Sq, E), lambda b: (b, 0, 0)),
        scratch_shapes=[pltpu.VMEM((Sq, E), jnp.float32)],   # per-head ctx slab
        compiler_params=pltpu.CompilerParams(
            dimension_semantics=("parallel",),
            vmem_limit_bytes=VMEM_LIMIT,
        ),
    )(*inputs)


def ffn_sublayer(params, x):
    """One fused pallas_call for the position-wise FFN sub-layer."""
    B, S, E = x.shape
    M = B * S
    x2 = x.reshape(M, E)
    d_ff = params["w1"].shape[1]

    # Large row tiles amortize per-step overhead and fill the MXU; pad the row
    # count so any B*S works.
    tm = M if M <= 512 else 512
    M_pad = pl.cdiv(M, tm) * tm
    if M_pad != M:
        x2 = jnp.pad(x2, ((0, M_pad - M), (0, 0)))

    const = lambda i: (0, 0)
    out = pl.pallas_call(
        _ffn_sublayer_kernel,
        grid=(M_pad // tm,),
        out_shape=jax.ShapeDtypeStruct((M_pad, E), jnp.float32),
        in_specs=[
            pl.BlockSpec((tm, E), lambda i: (i, 0)),          # x / residual
            pl.BlockSpec((E, d_ff), const),                   # w1 (bf16)
            pl.BlockSpec((1, d_ff), const),                   # b1
            pl.BlockSpec((d_ff, E), const),                   # w2 (bf16)
            pl.BlockSpec((1, E), const),                      # b2
            pl.BlockSpec((1, E), const),                      # ln gamma
            pl.BlockSpec((1, E), const),                      # ln beta
        ],
        out_specs=pl.BlockSpec((tm, E), lambda i: (i, 0)),
        compiler_params=pltpu.CompilerParams(
            dimension_semantics=("parallel",),
            vmem_limit_bytes=VMEM_LIMIT,
        ),
    )(x2, params["w1"], params["b1"], params["w2"], params["b2"],
      params["ln_g"], params["ln_b"])
    if M_pad != M:
        out = out[:M]
    return out.reshape(B, S, E)


# ------------------------------- Model glue ----------------------------------

def _init_linear(key, fan_in, fan_out):
    kw, kb = jax.random.split(key)
    bound = 1.0 / math.sqrt(fan_in)
    w = jax.random.uniform(kw, (fan_in, fan_out), jnp.float32, -bound, bound)
    b = jax.random.uniform(kb, (fan_out,), jnp.float32, -bound, bound)
    return w, b


def init_multi_head(key, emb_size):
    ks = jax.random.split(key, 4)
    wq, bq = _init_linear(ks[0], emb_size, emb_size)
    wk, bk = _init_linear(ks[1], emb_size, emb_size)
    wv, bv = _init_linear(ks[2], emb_size, emb_size)
    wo, bo = _init_linear(ks[3], emb_size, emb_size)
    return {
        # all projection weights kept in bf16 (MXU input dtype); biases f32.
        "wq": wq.astype(MATMUL_DTYPE),
        "bq": bq.reshape(1, emb_size),
        # fused (K|V) projection: one (E, 2E) matmul instead of two (E, E).
        "wkv": jnp.concatenate([wk, wv], axis=1).astype(MATMUL_DTYPE),
        "bkv": jnp.concatenate([bk, bv]).reshape(1, 2 * emb_size),
        "wo": wo.astype(MATMUL_DTYPE),
        "bo": bo.reshape(1, emb_size),
        "ln_g": jnp.ones((1, emb_size), jnp.float32),
        "ln_b": jnp.zeros((1, emb_size), jnp.float32),
    }


def init_ffn(key, emb_size, d_ff):
    k1, k2 = jax.random.split(key)
    w1, b1 = _init_linear(k1, emb_size, d_ff)
    w2, b2 = _init_linear(k2, d_ff, emb_size)
    return {
        "w1": w1.astype(MATMUL_DTYPE),
        "b1": b1.reshape(1, d_ff),
        "w2": w2.astype(MATMUL_DTYPE),
        "b2": b2.reshape(1, emb_size),
        "ln_g": jnp.ones((1, emb_size), jnp.float32),
        "ln_b": jnp.zeros((1, emb_size), jnp.float32),
    }


def decoder_layer_forward(params, x, src, h):
    # Dropout layers are identity (inference semantics).
    # trg_mask is the standard triangular causal mask (generated in-kernel);
    # src_mask is all-ones (no masking). Arbitrary masks: mask_mode="dense".
    out = mha_sublayer(params["self"], x, x, h, mask_mode="causal")    # self-attn
    out = mha_sublayer(params["cross"], out, src, h, mask_mode="none") # enc-dec attn
    out = ffn_sublayer(params["ffn"], out)                             # FFN
    return out


# ---------------------------------- Main -------------------------------------

if __name__ == "__main__":
    # Lane/sublane-aligned small shapes: E=128 (lanes), S=16 (sublanes).
    B, S, E, H, D_FF = 2, 16, 128, 4, 256

    root = jax.random.PRNGKey(0)
    k_self, k_cross, k_ffn, k_x, k_src = jax.random.split(root, 5)

    params = {
        "self": init_multi_head(k_self, E),
        "cross": init_multi_head(k_cross, E),
        "ffn": init_ffn(k_ffn, E, D_FF),
    }

    x = jax.random.normal(k_x, (B, S, E), jnp.float32)
    src = jax.random.normal(k_src, (B, S, E), jnp.float32)

    fwd = jax.jit(decoder_layer_forward, static_argnums=(3,))
    out = fwd(params, x, src, H)
    jax.block_until_ready(out)

    assert out.shape == (B, S, E)
    assert bool(jnp.all(jnp.isfinite(out)))

    # Sanity check: the dense-mask fallback (explicit triangular mask tensor)
    # matches the in-kernel causal path.
    trg_mask = jnp.broadcast_to(jnp.tril(jnp.ones((S, S), jnp.float32)),
                                (B, S, S))
    dense = mha_sublayer(params["self"], x, x, H, mask_mode="dense",
                         mask=trg_mask)
    causal = mha_sublayer(params["self"], x, x, H, mask_mode="causal")
    jax.block_until_ready((dense, causal))
    assert bool(jnp.allclose(dense, causal, atol=1e-4, rtol=1e-4))

    print("KERNEL_OK")
</pallas_src>

<mosaic_0001>
module attributes {stable_mosaic.version = 11 : i64} {
  func.func @_ffn_sublayer_kernel(%arg0: i32, %arg1: memref<32x128xf32, #tpu.memory_space<vmem>>, %arg2: memref<128x256xbf16, #tpu.memory_space<vmem>>, %arg3: memref<1x256xf32, #tpu.memory_space<vmem>>, %arg4: memref<256x128xbf16, #tpu.memory_space<vmem>>, %arg5: memref<1x128xf32, #tpu.memory_space<vmem>>, %arg6: memref<1x128xf32, #tpu.memory_space<vmem>>, %arg7: memref<1x128xf32, #tpu.memory_space<vmem>>, %arg8: memref<32x128xf32, #tpu.memory_space<vmem>>) attributes {dimension_semantics = [#tpu.dimension_semantics<parallel>], iteration_bounds = array<i64: 1>, scalar_prefetch = 0 : i64, scratch_operands = 0 : i64, tpu.core_type = #tpu.core_type<tc>, window_params = [{transform_indices = @transform_0, window_bounds = array<i64: 32, 128>}, {pipeline_mode = #tpu.pipeline_mode<synchronous>, transform_indices = @transform_1, window_bounds = array<i64: 128, 256>}, {pipeline_mode = #tpu.pipeline_mode<synchronous>, transform_indices = @transform_2, window_bounds = array<i64: 1, 256>}, {pipeline_mode = #tpu.pipeline_mode<synchronous>, transform_indices = @transform_3, window_bounds = array<i64: 256, 128>}, {pipeline_mode = #tpu.pipeline_mode<synchronous>, transform_indices = @transform_4, window_bounds = array<i64: 1, 128>}, {pipeline_mode = #tpu.pipeline_mode<synchronous>, transform_indices = @transform_5, window_bounds = array<i64: 1, 128>}, {pipeline_mode = #tpu.pipeline_mode<synchronous>, transform_indices = @transform_6, window_bounds = array<i64: 1, 128>}, {transform_indices = @transform_7, window_bounds = array<i64: 32, 128>}]} {
    %c0 = arith.constant 0 : index
    %c0_0 = arith.constant 0 : index
    %0 = vector.load %arg1[%c0, %c0_0] : memref<32x128xf32, #tpu.memory_space<vmem>>, vector<32x128xf32>
    %1 = arith.truncf %0 : vector<32x128xf32> to vector<32x128xbf16>
    %c0_1 = arith.constant 0 : index
    %c0_2 = arith.constant 0 : index
    %2 = vector.load %arg2[%c0_1, %c0_2] : memref<128x256xbf16, #tpu.memory_space<vmem>>, vector<128x256xbf16>
    %cst = arith.constant dense<0.000000e+00> : vector<32x256xf32>
    %3 = tpu.matmul %1, %2, %cst {dimension_numbers = #tpu.dot_dimension_numbers<[1], [0], [0], [1], [0, 0, 1, 1], [], []>} : vector<32x128xbf16>, vector<128x256xbf16>, vector<32x256xf32> -> vector<32x256xf32>
    %c0_3 = arith.constant 0 : index
    %c0_4 = arith.constant 0 : index
    %4 = vector.load %arg3[%c0_3, %c0_4] : memref<1x256xf32, #tpu.memory_space<vmem>>, vector<1x256xf32>
    %5 = vector.broadcast %4 : vector<1x256xf32> to vector<32x256xf32>
    %6 = arith.addf %3, %5 : vector<32x256xf32>
    %cst_5 = arith.constant 0.000000e+00 : f32
    %7 = vector.broadcast %cst_5 : f32 to vector<32x256xf32>
    %8 = arith.maximumf %6, %7 : vector<32x256xf32>
    %9 = arith.truncf %8 : vector<32x256xf32> to vector<32x256xbf16>
    %c0_6 = arith.constant 0 : index
    %c0_7 = arith.constant 0 : index
    %10 = vector.load %arg4[%c0_6, %c0_7] : memref<256x128xbf16, #tpu.memory_space<vmem>>, vector<256x128xbf16>
    %cst_8 = arith.constant dense<0.000000e+00> : vector<32x128xf32>
    %11 = tpu.matmul %9, %10, %cst_8 {dimension_numbers = #tpu.dot_dimension_numbers<[1], [0], [0], [1], [0, 0, 1, 1], [], []>} : vector<32x256xbf16>, vector<256x128xbf16>, vector<32x128xf32> -> vector<32x128xf32>
    %c0_9 = arith.constant 0 : index
    %c0_10 = arith.constant 0 : index
    %12 = vector.load %arg5[%c0_9, %c0_10] : memref<1x128xf32, #tpu.memory_space<vmem>>, vector<1x128xf32>
    %13 = vector.broadcast %12 : vector<1x128xf32> to vector<32x128xf32>
    %14 = arith.addf %11, %13 : vector<32x128xf32>
    %15 = arith.addf %14, %0 : vector<32x128xf32>
    %cst_11 = arith.constant dense<0.000000e+00> : vector<32xf32>
    %16 = vector.multi_reduction <add>, %15, %cst_11 [1] : vector<32x128xf32> to vector<32xf32>
    %17 = vector.shape_cast %16 : vector<32xf32> to vector<32x1xf32>
    %cst_12 = arith.constant 1.280000e+02 : f32
    %18 = vector.broadcast %cst_12 : f32 to vector<32x1xf32>
    %19 = arith.divf %17, %18 : vector<32x1xf32>
    %20 = arith.mulf %15, %15 : vector<32x128xf32>
    %cst_13 = arith.constant dense<0.000000e+00> : vector<32xf32>
    %21 = vector.multi_reduction <add>, %20, %cst_13 [1] : vector<32x128xf32> to vector<32xf32>
    %22 = vector.shape_cast %21 : vector<32xf32> to vector<32x1xf32>
    %cst_14 = arith.constant 1.280000e+02 : f32
    %23 = vector.broadcast %cst_14 : f32 to vector<32x1xf32>
    %24 = arith.divf %22, %23 : vector<32x1xf32>
    %25 = arith.mulf %19, %19 : vector<32x1xf32>
    %26 = arith.subf %24, %25 : vector<32x1xf32>
    %27 = vector.broadcast %19 : vector<32x1xf32> to vector<32x128xf32>
    %28 = arith.subf %15, %27 : vector<32x128xf32>
    %cst_15 = arith.constant 9.99999997E-7 : f32
    %29 = vector.broadcast %cst_15 : f32 to vector<32x1xf32>
    %30 = arith.addf %26, %29 : vector<32x1xf32>
    %31 = math.rsqrt %30 : vector<32x1xf32>
    %32 = vector.broadcast %31 : vector<32x1xf32> to vector<32x128xf32>
    %33 = arith.mulf %28, %32 : vector<32x128xf32>
    %c0_16 = arith.constant 0 : index
    %c0_17 = arith.constant 0 : index
    %34 = vector.load %arg6[%c0_16, %c0_17] : memref<1x128xf32, #tpu.memory_space<vmem>>, vector<1x128xf32>
    %35 = vector.broadcast %34 : vector<1x128xf32> to vector<32x128xf32>
    %36 = arith.mulf %33, %35 : vector<32x128xf32>
    %c0_18 = arith.constant 0 : index
    %c0_19 = arith.constant 0 : index
    %37 = vector.load %arg7[%c0_18, %c0_19] : memref<1x128xf32, #tpu.memory_space<vmem>>, vector<1x128xf32>
    %38 = vector.broadcast %37 : vector<1x128xf32> to vector<32x128xf32>
    %39 = arith.addf %36, %38 : vector<32x128xf32>
    %c0_20 = arith.constant 0 : index
    %c0_21 = arith.constant 0 : index
    %40 = vector.load %arg8[%c0_20, %c0_21] : memref<32x128xf32, #tpu.memory_space<vmem>>, vector<32x128xf32>
    tpu.vector_store %arg8[%c0_20, %c0_21], %39 {strides = array<i32>} : memref<32x128xf32, #tpu.memory_space<vmem>>, vector<32x128xf32>,
    return
  }
  func.func @transform_0(%arg0: i32) -> (i32, i32) {
    %c0_i32 = arith.constant 0 : i32
    %c0_i32_0 = arith.constant 0 : i32
    return %arg0, %c0_i32 : i32, i32
  }
  func.func @transform_1(%arg0: i32) -> (i32, i32) {
    %c0_i32 = arith.constant 0 : i32
    %c0_i32_0 = arith.constant 0 : i32
    %c0_i32_1 = arith.constant 0 : i32
    return %c0_i32, %c0_i32_0 : i32, i32
  }
  func.func @transform_2(%arg0: i32) -> (i32, i32) {
    %c0_i32 = arith.constant 0 : i32
    %c0_i32_0 = arith.constant 0 : i32
    %c0_i32_1 = arith.constant 0 : i32
    return %c0_i32, %c0_i32_0 : i32, i32
  }
  func.func @transform_3(%arg0: i32) -> (i32, i32) {
    %c0_i32 = arith.constant 0 : i32
    %c0_i32_0 = arith.constant 0 : i32
    %c0_i32_1 = arith.constant 0 : i32
    return %c0_i32, %c0_i32_0 : i32, i32
  }
  func.func @transform_4(%arg0: i32) -> (i32, i32) {
    %c0_i32 = arith.constant 0 : i32
    %c0_i32_0 = arith.constant 0 : i32
    %c0_i32_1 = arith.constant 0 : i32
    return %c0_i32, %c0_i32_0 : i32, i32
  }
  func.func @transform_5(%arg0: i32) -> (i32, i32) {
    %c0_i32 = arith.constant 0 : i32
    %c0_i32_0 = arith.constant 0 : i32
    %c0_i32_1 = arith.constant 0 : i32
    return %c0_i32, %c0_i32_0 : i32, i32
  }
  func.func @transform_6(%arg0: i32) -> (i32, i32) {
    %c0_i32 = arith.constant 0 : i32
    %c0_i32_0 = arith.constant 0 : i32
    %c0_i32_1 = arith.constant 0 : i32
    return %c0_i32, %c0_i32_0 : i32, i32
  }
  func.func @transform_7(%arg0: i32) -> (i32, i32) {
    %c0_i32 = arith.constant 0 : i32
    %c0_i32_0 = arith.constant 0 : i32
    return %arg0, %c0_i32 : i32, i32
  }
}

module attributes {stable_mosaic.version = 11 : i64} {
  func.func @_mha_sublayer_kernel(%arg0: i32, %arg1: memref<1x16x128xf32, #tpu.memory_space<vmem>>, %arg2: memref<1x16x128xf32, #tpu.memory_space<vmem>>, %arg3: memref<128x128xbf16, #tpu.memory_space<vmem>>, %arg4: memref<1x128xf32, #tpu.memory_space<vmem>>, %arg5: memref<128x256xbf16, #tpu.memory_space<vmem>>, %arg6: memref<1x256xf32, #tpu.memory_space<vmem>>, %arg7: memref<128x128xbf16, #tpu.memory_space<vmem>>, %arg8: memref<1x128xf32, #tpu.memory_space<vmem>>, %arg9: memref<1x128xf32, #tpu.memory_space<vmem>>, %arg10: memref<1x128xf32, #tpu.memory_space<vmem>>, %arg11: memref<1x16x128xf32, #tpu.memory_space<vmem>>, %arg12: memref<16x128xf32, #tpu.memory_space<vmem>>) attributes {dimension_semantics = [#tpu.dimension_semantics<parallel>], iteration_bounds = array<i64: 2>, scalar_prefetch = 0 : i64, scratch_operands = 1 : i64, tpu.core_type = #tpu.core_type<tc>, window_params = [{transform_indices = @transform_0, window_bounds = array<i64: 1, 16, 128>}, {transform_indices = @transform_1, window_bounds = array<i64: 1, 16, 128>}, {pipeline_mode = #tpu.pipeline_mode<synchronous>, transform_indices = @transform_2, window_bounds = array<i64: 128, 128>}, {pipeline_mode = #tpu.pipeline_mode<synchronous>, transform_indices = @transform_3, window_bounds = array<i64: 1, 128>}, {pipeline_mode = #tpu.pipeline_mode<synchronous>, transform_indices = @transform_4, window_bounds = array<i64: 128, 256>}, {pipeline_mode = #tpu.pipeline_mode<synchronous>, transform_indices = @transform_5, window_bounds = array<i64: 1, 256>}, {pipeline_mode = #tpu.pipeline_mode<synchronous>, transform_indices = @transform_6, window_bounds = array<i64: 128, 128>}, {pipeline_mode = #tpu.pipeline_mode<synchronous>, transform_indices = @transform_7, window_bounds = array<i64: 1, 128>}, {pipeline_mode = #tpu.pipeline_mode<synchronous>, transform_indices = @transform_8, window_bounds = array<i64: 1, 128>}, {pipeline_mode = #tpu.pipeline_mode<synchronous>, transform_indices = @transform_9, window_bounds = array<i64: 1, 128>}, {transform_indices = @transform_10, window_bounds = array<i64: 1, 16, 128>}]} {
    %c0 = arith.constant 0 : index
    %c0_0 = arith.constant 0 : index
    %c0_1 = arith.constant 0 : index
    %0 = vector.load %arg1[%c0, %c0_0, %c0_1] : memref<1x16x128xf32, #tpu.memory_space<vmem>>, vector<1x16x128xf32>
    %1 = vector.shape_cast %0 : vector<1x16x128xf32> to vector<16x128xf32>
    %c0_2 = arith.constant 0 : index
    %c0_3 = arith.constant 0 : index
    %c0_4 = arith.constant 0 : index
    %2 = vector.load %arg2[%c0_2, %c0_3, %c0_4] : memref<1x16x128xf32, #tpu.memory_space<vmem>>, vector<1x16x128xf32>
    %3 = vector.shape_cast %2 : vector<1x16x128xf32> to vector<16x128xf32>
    %4 = arith.truncf %1 : vector<16x128xf32> to vector<16x128xbf16>
    %c0_5 = arith.constant 0 : index
    %c0_6 = arith.constant 0 : index
    %5 = vector.load %arg3[%c0_5, %c0_6] : memref<128x128xbf16, #tpu.memory_space<vmem>>, vector<128x128xbf16>
    %cst = arith.constant dense<0.000000e+00> : vector<16x128xf32>
    %6 = tpu.matmul %4, %5, %cst {dimension_numbers = #tpu.dot_dimension_numbers<[1], [0], [0], [1], [0, 0, 1, 1], [], []>} : vector<16x128xbf16>, vector<128x128xbf16>, vector<16x128xf32> -> vector<16x128xf32>
    %c0_7 = arith.constant 0 : index
    %c0_8 = arith.constant 0 : index
    %7 = vector.load %arg4[%c0_7, %c0_8] : memref<1x128xf32, #tpu.memory_space<vmem>>, vector<1x128xf32>
    %8 = vector.broadcast %7 : vector<1x128xf32> to vector<16x128xf32>
    %9 = arith.addf %6, %8 : vector<16x128xf32>
    %10 = arith.truncf %9 : vector<16x128xf32> to vector<16x128xbf16>
    %11 = arith.truncf %3 : vector<16x128xf32> to vector<16x128xbf16>
    %c0_9 = arith.constant 0 : index
    %c0_10 = arith.constant 0 : index
    %12 = vector.load %arg5[%c0_9, %c0_10] : memref<128x256xbf16, #tpu.memory_space<vmem>>, vector<128x256xbf16>
    %cst_11 = arith.constant dense<0.000000e+00> : vector<16x256xf32>
    %13 = tpu.matmul %11, %12, %cst_11 {dimension_numbers = #tpu.dot_dimension_numbers<[1], [0], [0], [1], [0, 0, 1, 1], [], []>} : vector<16x128xbf16>, vector<128x256xbf16>, vector<16x256xf32> -> vector<16x256xf32>
    %c0_12 = arith.constant 0 : index
    %c0_13 = arith.constant 0 : index
    %14 = vector.load %arg6[%c0_12, %c0_13] : memref<1x256xf32, #tpu.memory_space<vmem>>, vector<1x256xf32>
    %15 = vector.broadcast %14 : vector<1x256xf32> to vector<16x256xf32>
    %16 = arith.addf %13, %15 : vector<16x256xf32>
    %17 = vector.extract_strided_slice %16 {offsets = [0, 0], sizes = [16, 128], strides = [1, 1]} : vector<16x256xf32> to vector<16x128xf32>
    %18 = arith.truncf %17 : vector<16x128xf32> to vector<16x128xbf16>
    %19 = vector.extract_strided_slice %16 {offsets = [0, 128], sizes = [16, 128], strides = [1, 1]} : vector<16x256xf32> to vector<16x128xf32>
    %20 = arith.truncf %19 : vector<16x128xf32> to vector<16x128xbf16>
    %21 = vector.extract_strided_slice %10 {offsets = [0, 0], sizes = [16, 32], strides = [1, 1]} : vector<16x128xbf16> to vector<16x32xbf16>
    %22 = vector.extract_strided_slice %18 {offsets = [0, 0], sizes = [16, 32], strides = [1, 1]} : vector<16x128xbf16> to vector<16x32xbf16>
    %23 = vector.extract_strided_slice %20 {offsets = [0, 0], sizes = [16, 32], strides = [1, 1]} : vector<16x128xbf16> to vector<16x32xbf16>
    %cst_14 = arith.constant dense<0.000000e+00> : vector<16x16xf32>
    %24 = tpu.matmul %21, %22, %cst_14 {dimension_numbers = #tpu.dot_dimension_numbers<[1], [1], [0], [0], [0, 0, 1, 0], [], []>} : vector<16x32xbf16>, vector<16x32xbf16>, vector<16x16xf32> -> vector<16x16xf32>
    %cst_15 = arith.constant 0.176776692 : f32
    %25 = vector.broadcast %cst_15 : f32 to vector<16x16xf32>
    %26 = arith.mulf %24, %25 : vector<16x16xf32>
    %cst_16 = arith.constant dense<0xFF800000> : vector<16xf32>
    %27 = vector.multi_reduction <maximumf>, %26, %cst_16 [1] : vector<16x16xf32> to vector<16xf32>
    %28 = vector.shape_cast %27 : vector<16xf32> to vector<16x1xf32>
    %29 = vector.broadcast %28 : vector<16x1xf32> to vector<16x16xf32>
    %30 = arith.subf %26, %29 : vector<16x16xf32>
    %31 = math.exp %30 : vector<16x16xf32>
    %cst_17 = arith.constant dense<0.000000e+00> : vector<16xf32>
    %32 = vector.multi_reduction <add>, %31, %cst_17 [1] : vector<16x16xf32> to vector<16xf32>
    %33 = vector.shape_cast %32 : vector<16xf32> to vector<16x1xf32>
    %34 = tpu.reciprocal %33 {approx = true} : vector<16x1xf32> -> vector<16x1xf32>
    %35 = vector.broadcast %34 : vector<16x1xf32> to vector<16x16xf32>
    %36 = arith.mulf %31, %35 : vector<16x16xf32>
    %37 = arith.truncf %36 : vector<16x16xf32> to vector<16x16xbf16>
    %cst_18 = arith.constant dense<0.000000e+00> : vector<16x32xf32>
    %38 = tpu.matmul %37, %23, %cst_18 {dimension_numbers = #tpu.dot_dimension_numbers<[1], [0], [0], [1], [0, 0, 1, 1], [], []>} : vector<16x16xbf16>, vector<16x32xbf16>, vector<16x32xf32> -> vector<16x32xf32>
    %c0_19 = arith.constant 0 : index
    %c0_20 = arith.constant 0 : index
    %39 = vector.load %arg12[%c0_19, %c0_20] : memref<16x128xf32, #tpu.memory_space<vmem>>, vector<16x32xf32>
    tpu.vector_store %arg12[%c0_19, %c0_20], %38 {strides = array<i32>} : memref<16x128xf32, #tpu.memory_space<vmem>>, vector<16x32xf32>,
    %40 = vector.extract_strided_slice %10 {offsets = [0, 32], sizes = [16, 32], strides = [1, 1]} : vector<16x128xbf16> to vector<16x32xbf16>
    %41 = vector.extract_strided_slice %18 {offsets = [0, 32], sizes = [16, 32], strides = [1, 1]} : vector<16x128xbf16> to vector<16x32xbf16>
    %42 = vector.extract_strided_slice %20 {offsets = [0, 32], sizes = [16, 32], strides = [1, 1]} : vector<16x128xbf16> to vector<16x32xbf16>
    %cst_21 = arith.constant dense<0.000000e+00> : vector<16x16xf32>
    %43 = tpu.matmul %40, %41, %cst_21 {dimension_numbers = #tpu.dot_dimension_numbers<[1], [1], [0], [0], [0, 0, 1, 0], [], []>} : vector<16x32xbf16>, vector<16x32xbf16>, vector<16x16xf32> -> vector<16x16xf32>
    %cst_22 = arith.constant 0.176776692 : f32
    %44 = vector.broadcast %cst_22 : f32 to vector<16x16xf32>
    %45 = arith.mulf %43, %44 : vector<16x16xf32>
    %cst_23 = arith.constant dense<0xFF800000> : vector<16xf32>
    %46 = vector.multi_reduction <maximumf>, %45, %cst_23 [1] : vector<16x16xf32> to vector<16xf32>
    %47 = vector.shape_cast %46 : vector<16xf32> to vector<16x1xf32>
    %48 = vector.broadcast %47 : vector<16x1xf32> to vector<16x16xf32>
    %49 = arith.subf %45, %48 : vector<16x16xf32>
    %50 = math.exp %49 : vector<16x16xf32>
    %cst_24 = arith.constant dense<0.000000e+00> : vector<16xf32>
    %51 = vector.multi_reduction <add>, %50, %cst_24 [1] : vector<16x16xf32> to vector<16xf32>
    %52 = vector.shape_cast %51 : vector<16xf32> to vector<16x1xf32>
    %53 = tpu.reciprocal %52 {approx = true} : vector<16x1xf32> -> vector<16x1xf32>
    %54 = vector.broadcast %53 : vector<16x1xf32> to vector<16x16xf32>
    %55 = arith.mulf %50, %54 : vector<16x16xf32>
    %56 = arith.truncf %55 : vector<16x16xf32> to vector<16x16xbf16>
    %cst_25 = arith.constant dense<0.000000e+00> : vector<16x32xf32>
    %57 = tpu.matmul %56, %42, %cst_25 {dimension_numbers = #tpu.dot_dimension_numbers<[1], [0], [0], [1], [0, 0, 1, 1], [], []>} : vector<16x16xbf16>, vector<16x32xbf16>, vector<16x32xf32> -> vector<16x32xf32>
    %c0_26 = arith.constant 0 : index
    %c32 = arith.constant 32 : index
    %58 = vector.load %arg12[%c0_26, %c32] : memref<16x128xf32, #tpu.memory_space<vmem>>, vector<16x32xf32>
    tpu.vector_store %arg12[%c0_26, %c32], %57 {strides = array<i32>} : memref<16x128xf32, #tpu.memory_space<vmem>>, vector<16x32xf32>,
    %59 = vector.extract_strided_slice %10 {offsets = [0, 64], sizes = [16, 32], strides = [1, 1]} : vector<16x128xbf16> to vector<16x32xbf16>
    %60 = vector.extract_strided_slice %18 {offsets = [0, 64], sizes = [16, 32], strides = [1, 1]} : vector<16x128xbf16> to vector<16x32xbf16>
    %61 = vector.extract_strided_slice %20 {offsets = [0, 64], sizes = [16, 32], strides = [1, 1]} : vector<16x128xbf16> to vector<16x32xbf16>
    %cst_27 = arith.constant dense<0.000000e+00> : vector<16x16xf32>
    %62 = tpu.matmul %59, %60, %cst_27 {dimension_numbers = #tpu.dot_dimension_numbers<[1], [1], [0], [0], [0, 0, 1, 0], [], []>} : vector<16x32xbf16>, vector<16x32xbf16>, vector<16x16xf32> -> vector<16x16xf32>
    %cst_28 = arith.constant 0.176776692 : f32
    %63 = vector.broadcast %cst_28 : f32 to vector<16x16xf32>
    %64 = arith.mulf %62, %63 : vector<16x16xf32>
    %cst_29 = arith.constant dense<0xFF800000> : vector<16xf32>
    %65 = vector.multi_reduction <maximumf>, %64, %cst_29 [1] : vector<16x16xf32> to vector<16xf32>
    %66 = vector.shape_cast %65 : vector<16xf32> to vector<16x1xf32>
    %67 = vector.broadcast %66 : vector<16x1xf32> to vector<16x16xf32>
    %68 = arith.subf %64, %67 : vector<16x16xf32>
    %69 = math.exp %68 : vector<16x16xf32>
    %cst_30 = arith.constant dense<0.000000e+00> : vector<16xf32>
    %70 = vector.multi_reduction <add>, %69, %cst_30 [1] : vector<16x16xf32> to vector<16xf32>
    %71 = vector.shape_cast %70 : vector<16xf32> to vector<16x1xf32>
    %72 = tpu.reciprocal %71 {approx = true} : vector<16x1xf32> -> vector<16x1xf32>
    %73 = vector.broadcast %72 : vector<16x1xf32> to vector<16x16xf32>
    %74 = arith.mulf %69, %73 : vector<16x16xf32>
    %75 = arith.truncf %74 : vector<16x16xf32> to vector<16x16xbf16>
    %cst_31 = arith.constant dense<0.000000e+00> : vector<16x32xf32>
    %76 = tpu.matmul %75, %61, %cst_31 {dimension_numbers = #tpu.dot_dimension_numbers<[1], [0], [0], [1], [0, 0, 1, 1], [], []>} : vector<16x16xbf16>, vector<16x32xbf16>, vector<16x32xf32> -> vector<16x32xf32>
    %c0_32 = arith.constant 0 : index
    %c64 = arith.constant 64 : index
    %77 = vector.load %arg12[%c0_32, %c64] : memref<16x128xf32, #tpu.memory_space<vmem>>, vector<16x32xf32>
    tpu.vector_store %arg12[%c0_32, %c64], %76 {strides = array<i32>} : memref<16x128xf32, #tpu.memory_space<vmem>>, vector<16x32xf32>,
    %78 = vector.extract_strided_slice %10 {offsets = [0, 96], sizes = [16, 32], strides = [1, 1]} : vector<16x128xbf16> to vector<16x32xbf16>
    %79 = vector.extract_strided_slice %18 {offsets = [0, 96], sizes = [16, 32], strides = [1, 1]} : vector<16x128xbf16> to vector<16x32xbf16>
    %80 = vector.extract_strided_slice %20 {offsets = [0, 96], sizes = [16, 32], strides = [1, 1]} : vector<16x128xbf16> to vector<16x32xbf16>
    %cst_33 = arith.constant dense<0.000000e+00> : vector<16x16xf32>
    %81 = tpu.matmul %78, %79, %cst_33 {dimension_numbers = #tpu.dot_dimension_numbers<[1], [1], [0], [0], [0, 0, 1, 0], [], []>} : vector<16x32xbf16>, vector<16x32xbf16>, vector<16x16xf32> -> vector<16x16xf32>
    %cst_34 = arith.constant 0.176776692 : f32
    %82 = vector.broadcast %cst_34 : f32 to vector<16x16xf32>
    %83 = arith.mulf %81, %82 : vector<16x16xf32>
    %cst_35 = arith.constant dense<0xFF800000> : vector<16xf32>
    %84 = vector.multi_reduction <maximumf>, %83, %cst_35 [1] : vector<16x16xf32> to vector<16xf32>
    %85 = vector.shape_cast %84 : vector<16xf32> to vector<16x1xf32>
    %86 = vector.broadcast %85 : vector<16x1xf32> to vector<16x16xf32>
    %87 = arith.subf %83, %86 : vector<16x16xf32>
    %88 = math.exp %87 : vector<16x16xf32>
    %cst_36 = arith.constant dense<0.000000e+00> : vector<16xf32>
    %89 = vector.multi_reduction <add>, %88, %cst_36 [1] : vector<16x16xf32> to vector<16xf32>
    %90 = vector.shape_cast %89 : vector<16xf32> to vector<16x1xf32>
    %91 = tpu.reciprocal %90 {approx = true} : vector<16x1xf32> -> vector<16x1xf32>
    %92 = vector.broadcast %91 : vector<16x1xf32> to vector<16x16xf32>
    %93 = arith.mulf %88, %92 : vector<16x16xf32>
    %94 = arith.truncf %93 : vector<16x16xf32> to vector<16x16xbf16>
    %cst_37 = arith.constant dense<0.000000e+00> : vector<16x32xf32>
    %95 = tpu.matmul %94, %80, %cst_37 {dimension_numbers = #tpu.dot_dimension_numbers<[1], [0], [0], [1], [0, 0, 1, 1], [], []>} : vector<16x16xbf16>, vector<16x32xbf16>, vector<16x32xf32> -> vector<16x32xf32>
    %c0_38 = arith.constant 0 : index
    %c96 = arith.constant 96 : index
    %96 = vector.load %arg12[%c0_38, %c96] : memref<16x128xf32, #tpu.memory_space<vmem>>, vector<16x32xf32>
    tpu.vector_store %arg12[%c0_38, %c96], %95 {strides = array<i32>} : memref<16x128xf32, #tpu.memory_space<vmem>>, vector<16x32xf32>,
    %c0_39 = arith.constant 0 : index
    %c0_40 = arith.constant 0 : index
    %97 = vector.load %arg12[%c0_39, %c0_40] : memref<16x128xf32, #tpu.memory_space<vmem>>, vector<16x128xf32>
    %98 = arith.truncf %97 : vector<16x128xf32> to vector<16x128xbf16>
    %c0_41 = arith.constant 0 : index
    %c0_42 = arith.constant 0 : index
    %99 = vector.load %arg7[%c0_41, %c0_42] : memref<128x128xbf16, #tpu.memory_space<vmem>>, vector<128x128xbf16>
    %cst_43 = arith.constant dense<0.000000e+00> : vector<16x128xf32>
    %100 = tpu.matmul %98, %99, %cst_43 {dimension_numbers = #tpu.dot_dimension_numbers<[1], [0], [0], [1], [0, 0, 1, 1], [], []>} : vector<16x128xbf16>, vector<128x128xbf16>, vector<16x128xf32> -> vector<16x128xf32>
    %c0_44 = arith.constant 0 : index
    %c0_45 = arith.constant 0 : index
    %101 = vector.load %arg8[%c0_44, %c0_45] : memref<1x128xf32, #tpu.memory_space<vmem>>, vector<1x128xf32>
    %102 = vector.broadcast %101 : vector<1x128xf32> to vector<16x128xf32>
    %103 = arith.addf %100, %102 : vector<16x128xf32>
    %104 = arith.addf %103, %1 : vector<16x128xf32>
    %cst_46 = arith.constant dense<0.000000e+00> : vector<16xf32>
    %105 = vector.multi_reduction <add>, %104, %cst_46 [1] : vector<16x128xf32> to vector<16xf32>
    %106 = vector.shape_cast %105 : vector<16xf32> to vector<16x1xf32>
    %cst_47 = arith.constant 1.280000e+02 : f32
    %107 = vector.broadcast %cst_47 : f32 to vector<16x1xf32>
    %108 = arith.divf %106, %107 : vector<16x1xf32>
    %109 = arith.mulf %104, %104 : vector<16x128xf32>
    %cst_48 = arith.constant dense<0.000000e+00> : vector<16xf32>
    %110 = vector.multi_reduction <add>, %109, %cst_48 [1] : vector<16x128xf32> to vector<16xf32>
    %111 = vector.shape_cast %110 : vector<16xf32> to vector<16x1xf32>
    %cst_49 = arith.constant 1.280000e+02 : f32
    %112 = vector.broadcast %cst_49 : f32 to vector<16x1xf32>
    %113 = arith.divf %111, %112 : vector<16x1xf32>
    %114 = arith.mulf %108, %108 : vector<16x1xf32>
    %115 = arith.subf %113, %114 : vector<16x1xf32>
    %116 = vector.broadcast %108 : vector<16x1xf32> to vector<16x128xf32>
    %117 = arith.subf %104, %116 : vector<16x128xf32>
    %cst_50 = arith.constant 9.99999997E-7 : f32
    %118 = vector.broadcast %cst_50 : f32 to vector<16x1xf32>
    %119 = arith.addf %115, %118 : vector<16x1xf32>
    %120 = math.rsqrt %119 : vector<16x1xf32>
    %121 = vector.broadcast %120 : vector<16x1xf32> to vector<16x128xf32>
    %122 = arith.mulf %117, %121 : vector<16x128xf32>
    %c0_51 = arith.constant 0 : index
    %c0_52 = arith.constant 0 : index
    %123 = vector.load %arg9[%c0_51, %c0_52] : memref<1x128xf32, #tpu.memory_space<vmem>>, vector<1x128xf32>
    %124 = vector.broadcast %123 : vector<1x128xf32> to vector<16x128xf32>
    %125 = arith.mulf %122, %124 : vector<16x128xf32>
    %c0_53 = arith.constant 0 : index
    %c0_54 = arith.constant 0 : index
    %126 = vector.load %arg10[%c0_53, %c0_54] : memref<1x128xf32, #tpu.memory_space<vmem>>, vector<1x128xf32>
    %127 = vector.broadcast %126 : vector<1x128xf32> to vector<16x128xf32>
    %128 = arith.addf %125, %127 : vector<16x128xf32>
    %c0_55 = arith.constant 0 : index
    %c0_56 = arith.constant 0 : index
    %c0_57 = arith.constant 0 : index
    %129 = vector.load %arg11[%c0_55, %c0_56, %c0_57] : memref<1x16x128xf32, #tpu.memory_space<vmem>>, vector<1x16x128xf32>
    %130 = vector.shape_cast %129 : vector<1x16x128xf32> to vector<16x128xf32>
    %131 = vector.shape_cast %128 : vector<16x128xf32> to vector<1x16x128xf32>
    tpu.vector_store %arg11[%c0_55, %c0_56, %c0_57], %131 {strides = array<i32>} : memref<1x16x128xf32, #tpu.memory_space<vmem>>, vector<1x16x128xf32>,
    return
  }
  func.func @transform_0(%arg0: i32) -> (i32, i32, i32) {
    %c0_i32 = arith.constant 0 : i32
    %c0_i32_0 = arith.constant 0 : i32
    %c0_i32_1 = arith.constant 0 : i32
    return %arg0, %c0_i32, %c0_i32_0 : i32, i32, i32
  }
  func.func @transform_1(%arg0: i32) -> (i32, i32, i32) {
    %c0_i32 = arith.constant 0 : i32
    %c0_i32_0 = arith.constant 0 : i32
    %c0_i32_1 = arith.constant 0 : i32
    return %arg0, %c0_i32, %c0_i32_0 : i32, i32, i32
  }
  func.func @transform_2(%arg0: i32) -> (i32, i32) {
    %c0_i32 = arith.constant 0 : i32
    %c0_i32_0 = arith.constant 0 : i32
    %c0_i32_1 = arith.constant 0 : i32
    return %c0_i32, %c0_i32_0 : i32, i32
  }
  func.func @transform_3(%arg0: i32) -> (i32, i32) {
    %c0_i32 = arith.constant 0 : i32
    %c0_i32_0 = arith.constant 0 : i32
    %c0_i32_1 = arith.constant 0 : i32
    return %c0_i32, %c0_i32_0 : i32, i32
  }
  func.func @transform_4(%arg0: i32) -> (i32, i32) {
    %c0_i32 = arith.constant 0 : i32
    %c0_i32_0 = arith.constant 0 : i32
    %c0_i32_1 = arith.constant 0 : i32
    return %c0_i32, %c0_i32_0 : i32, i32
  }
  func.func @transform_5(%arg0: i32) -> (i32, i32) {
    %c0_i32 = arith.constant 0 : i32
    %c0_i32_0 = arith.constant 0 : i32
    %c0_i32_1 = arith.constant 0 : i32
    return %c0_i32, %c0_i32_0 : i32, i32
  }
  func.func @transform_6(%arg0: i32) -> (i32, i32) {
    %c0_i32 = arith.constant 0 : i32
    %c0_i32_0 = arith.constant 0 : i32
    %c0_i32_1 = arith.constant 0 : i32
    return %c0_i32, %c0_i32_0 : i32, i32
  }
  func.func @transform_7(%arg0: i32) -> (i32, i32) {
    %c0_i32 = arith.constant 0 : i32
    %c0_i32_0 = arith.constant 0 : i32
    %c0_i32_1 = arith.constant 0 : i32
    return %c0_i32, %c0_i32_0 : i32, i32
  }
  func.func @transform_8(%arg0: i32) -> (i32, i32) {
    %c0_i32 = arith.constant 0 : i32
    %c0_i32_0 = arith.constant 0 : i32
    %c0_i32_1 = arith.constant 0 : i32
    return %c0_i32, %c0_i32_0 : i32, i32
  }
  func.func @transform_9(%arg0: i32) -> (i32, i32) {
    %c0_i32 = arith.constant 0 : i32
    %c0_i32_0 = arith.constant 0 : i32
    %c0_i32_1 = arith.constant 0 : i32
    return %c0_i32, %c0_i32_0 : i32, i32
  }
  func.func @transform_10(%arg0: i32) -> (i32, i32, i32) {
    %c0_i32 = arith.constant 0 : i32
    %c0_i32_0 = arith.constant 0 : i32
    %c0_i32_1 = arith.constant 0 : i32
    return %arg0, %c0_i32, %c0_i32_0 : i32, i32, i32
  }
}

module attributes {stable_mosaic.version = 11 : i64} {
  func.func @_mha_sublayer_kernel(%arg0: i32, %arg1: memref<1x16x128xf32, #tpu.memory_space<vmem>>, %arg2: memref<1x16x128xf32, #tpu.memory_space<vmem>>, %arg3: memref<128x128xbf16, #tpu.memory_space<vmem>>, %arg4: memref<1x128xf32, #tpu.memory_space<vmem>>, %arg5: memref<128x256xbf16, #tpu.memory_space<vmem>>, %arg6: memref<1x256xf32, #tpu.memory_space<vmem>>, %arg7: memref<128x128xbf16, #tpu.memory_space<vmem>>, %arg8: memref<1x128xf32, #tpu.memory_space<vmem>>, %arg9: memref<1x128xf32, #tpu.memory_space<vmem>>, %arg10: memref<1x128xf32, #tpu.memory_space<vmem>>, %arg11: memref<1x16x128xf32, #tpu.memory_space<vmem>>, %arg12: memref<16x128xf32, #tpu.memory_space<vmem>>) attributes {dimension_semantics = [#tpu.dimension_semantics<parallel>], iteration_bounds = array<i64: 2>, scalar_prefetch = 0 : i64, scratch_operands = 1 : i64, tpu.core_type = #tpu.core_type<tc>, window_params = [{transform_indices = @transform_0, window_bounds = array<i64: 1, 16, 128>}, {transform_indices = @transform_1, window_bounds = array<i64: 1, 16, 128>}, {pipeline_mode = #tpu.pipeline_mode<synchronous>, transform_indices = @transform_2, window_bounds = array<i64: 128, 128>}, {pipeline_mode = #tpu.pipeline_mode<synchronous>, transform_indices = @transform_3, window_bounds = array<i64: 1, 128>}, {pipeline_mode = #tpu.pipeline_mode<synchronous>, transform_indices = @transform_4, window_bounds = array<i64: 128, 256>}, {pipeline_mode = #tpu.pipeline_mode<synchronous>, transform_indices = @transform_5, window_bounds = array<i64: 1, 256>}, {pipeline_mode = #tpu.pipeline_mode<synchronous>, transform_indices = @transform_6, window_bounds = array<i64: 128, 128>}, {pipeline_mode = #tpu.pipeline_mode<synchronous>, transform_indices = @transform_7, window_bounds = array<i64: 1, 128>}, {pipeline_mode = #tpu.pipeline_mode<synchronous>, transform_indices = @transform_8, window_bounds = array<i64: 1, 128>}, {pipeline_mode = #tpu.pipeline_mode<synchronous>, transform_indices = @transform_9, window_bounds = array<i64: 1, 128>}, {transform_indices = @transform_10, window_bounds = array<i64: 1, 16, 128>}]} {
    %c0 = arith.constant 0 : index
    %c0_0 = arith.constant 0 : index
    %c0_1 = arith.constant 0 : index
    %0 = vector.load %arg1[%c0, %c0_0, %c0_1] : memref<1x16x128xf32, #tpu.memory_space<vmem>>, vector<1x16x128xf32>
    %1 = vector.shape_cast %0 : vector<1x16x128xf32> to vector<16x128xf32>
    %c0_2 = arith.constant 0 : index
    %c0_3 = arith.constant 0 : index
    %c0_4 = arith.constant 0 : index
    %2 = vector.load %arg2[%c0_2, %c0_3, %c0_4] : memref<1x16x128xf32, #tpu.memory_space<vmem>>, vector<1x16x128xf32>
    %3 = vector.shape_cast %2 : vector<1x16x128xf32> to vector<16x128xf32>
    %4 = arith.truncf %1 : vector<16x128xf32> to vector<16x128xbf16>
    %c0_5 = arith.constant 0 : index
    %c0_6 = arith.constant 0 : index
    %5 = vector.load %arg3[%c0_5, %c0_6] : memref<128x128xbf16, #tpu.memory_space<vmem>>, vector<128x128xbf16>
    %cst = arith.constant dense<0.000000e+00> : vector<16x128xf32>
    %6 = tpu.matmul %4, %5, %cst {dimension_numbers = #tpu.dot_dimension_numbers<[1], [0], [0], [1], [0, 0, 1, 1], [], []>} : vector<16x128xbf16>, vector<128x128xbf16>, vector<16x128xf32> -> vector<16x128xf32>
    %c0_7 = arith.constant 0 : index
    %c0_8 = arith.constant 0 : index
    %7 = vector.load %arg4[%c0_7, %c0_8] : memref<1x128xf32, #tpu.memory_space<vmem>>, vector<1x128xf32>
    %8 = vector.broadcast %7 : vector<1x128xf32> to vector<16x128xf32>
    %9 = arith.addf %6, %8 : vector<16x128xf32>
    %10 = arith.truncf %9 : vector<16x128xf32> to vector<16x128xbf16>
    %11 = arith.truncf %3 : vector<16x128xf32> to vector<16x128xbf16>
    %c0_9 = arith.constant 0 : index
    %c0_10 = arith.constant 0 : index
    %12 = vector.load %arg5[%c0_9, %c0_10] : memref<128x256xbf16, #tpu.memory_space<vmem>>, vector<128x256xbf16>
    %cst_11 = arith.constant dense<0.000000e+00> : vector<16x256xf32>
    %13 = tpu.matmul %11, %12, %cst_11 {dimension_numbers = #tpu.dot_dimension_numbers<[1], [0], [0], [1], [0, 0, 1, 1], [], []>} : vector<16x128xbf16>, vector<128x256xbf16>, vector<16x256xf32> -> vector<16x256xf32>
    %c0_12 = arith.constant 0 : index
    %c0_13 = arith.constant 0 : index
    %14 = vector.load %arg6[%c0_12, %c0_13] : memref<1x256xf32, #tpu.memory_space<vmem>>, vector<1x256xf32>
    %15 = vector.broadcast %14 : vector<1x256xf32> to vector<16x256xf32>
    %16 = arith.addf %13, %15 : vector<16x256xf32>
    %17 = vector.extract_strided_slice %16 {offsets = [0, 0], sizes = [16, 128], strides = [1, 1]} : vector<16x256xf32> to vector<16x128xf32>
    %18 = arith.truncf %17 : vector<16x128xf32> to vector<16x128xbf16>
    %19 = vector.extract_strided_slice %16 {offsets = [0, 128], sizes = [16, 128], strides = [1, 1]} : vector<16x256xf32> to vector<16x128xf32>
    %20 = arith.truncf %19 : vector<16x128xf32> to vector<16x128xbf16>
    %21 = tpu.iota {dimensions = array<i32: 0>} : vector<16x16xi32>
    %22 = tpu.iota {dimensions = array<i32: 1>} : vector<16x16xi32>
    %23 = arith.cmpi sge, %21, %22 : vector<16x16xi32>
    %24 = vector.extract_strided_slice %10 {offsets = [0, 0], sizes = [16, 32], strides = [1, 1]} : vector<16x128xbf16> to vector<16x32xbf16>
    %25 = vector.extract_strided_slice %18 {offsets = [0, 0], sizes = [16, 32], strides = [1, 1]} : vector<16x128xbf16> to vector<16x32xbf16>
    %26 = vector.extract_strided_slice %20 {offsets = [0, 0], sizes = [16, 32], strides = [1, 1]} : vector<16x128xbf16> to vector<16x32xbf16>
    %cst_14 = arith.constant dense<0.000000e+00> : vector<16x16xf32>
    %27 = tpu.matmul %24, %25, %cst_14 {dimension_numbers = #tpu.dot_dimension_numbers<[1], [1], [0], [0], [0, 0, 1, 0], [], []>} : vector<16x32xbf16>, vector<16x32xbf16>, vector<16x16xf32> -> vector<16x16xf32>
    %cst_15 = arith.constant 0.176776692 : f32
    %28 = vector.broadcast %cst_15 : f32 to vector<16x16xf32>
    %29 = arith.mulf %27, %28 : vector<16x16xf32>
    %cst_16 = arith.constant -1.000000e+09 : f32
    %30 = vector.broadcast %cst_16 : f32 to vector<16x16xf32>
    %31 = arith.select %23, %29, %30 : vector<16x16xi1>, vector<16x16xf32>
    %cst_17 = arith.constant dense<0xFF800000> : vector<16xf32>
    %32 = vector.multi_reduction <maximumf>, %31, %cst_17 [1] : vector<16x16xf32> to vector<16xf32>
    %33 = vector.shape_cast %32 : vector<16xf32> to vector<16x1xf32>
    %34 = vector.broadcast %33 : vector<16x1xf32> to vector<16x16xf32>
    %35 = arith.subf %31, %34 : vector<16x16xf32>
    %36 = math.exp %35 : vector<16x16xf32>
    %cst_18 = arith.constant dense<0.000000e+00> : vector<16xf32>
    %37 = vector.multi_reduction <add>, %36, %cst_18 [1] : vector<16x16xf32> to vector<16xf32>
    %38 = vector.shape_cast %37 : vector<16xf32> to vector<16x1xf32>
    %39 = tpu.reciprocal %38 {approx = true} : vector<16x1xf32> -> vector<16x1xf32>
    %40 = vector.broadcast %39 : vector<16x1xf32> to vector<16x16xf32>
    %41 = arith.mulf %36, %40 : vector<16x16xf32>
    %42 = arith.truncf %41 : vector<16x16xf32> to vector<16x16xbf16>
    %cst_19 = arith.constant dense<0.000000e+00> : vector<16x32xf32>
    %43 = tpu.matmul %42, %26, %cst_19 {dimension_numbers = #tpu.dot_dimension_numbers<[1], [0], [0], [1], [0, 0, 1, 1], [], []>} : vector<16x16xbf16>, vector<16x32xbf16>, vector<16x32xf32> -> vector<16x32xf32>
    %c0_20 = arith.constant 0 : index
    %c0_21 = arith.constant 0 : index
    %44 = vector.load %arg12[%c0_20, %c0_21] : memref<16x128xf32, #tpu.memory_space<vmem>>, vector<16x32xf32>
    tpu.vector_store %arg12[%c0_20, %c0_21], %43 {strides = array<i32>} : memref<16x128xf32, #tpu.memory_space<vmem>>, vector<16x32xf32>,
    %45 = vector.extract_strided_slice %10 {offsets = [0, 32], sizes = [16, 32], strides = [1, 1]} : vector<16x128xbf16> to vector<16x32xbf16>
    %46 = vector.extract_strided_slice %18 {offsets = [0, 32], sizes = [16, 32], strides = [1, 1]} : vector<16x128xbf16> to vector<16x32xbf16>
    %47 = vector.extract_strided_slice %20 {offsets = [0, 32], sizes = [16, 32], strides = [1, 1]} : vector<16x128xbf16> to vector<16x32xbf16>
    %cst_22 = arith.constant dense<0.000000e+00> : vector<16x16xf32>
    %48 = tpu.matmul %45, %46, %cst_22 {dimension_numbers = #tpu.dot_dimension_numbers<[1], [1], [0], [0], [0, 0, 1, 0], [], []>} : vector<16x32xbf16>, vector<16x32xbf16>, vector<16x16xf32> -> vector<16x16xf32>
    %cst_23 = arith.constant 0.176776692 : f32
    %49 = vector.broadcast %cst_23 : f32 to vector<16x16xf32>
    %50 = arith.mulf %48, %49 : vector<16x16xf32>
    %cst_24 = arith.constant -1.000000e+09 : f32
    %51 = vector.broadcast %cst_24 : f32 to vector<16x16xf32>
    %52 = arith.select %23, %50, %51 : vector<16x16xi1>, vector<16x16xf32>
    %cst_25 = arith.constant dense<0xFF800000> : vector<16xf32>
    %53 = vector.multi_reduction <maximumf>, %52, %cst_25 [1] : vector<16x16xf32> to vector<16xf32>
    %54 = vector.shape_cast %53 : vector<16xf32> to vector<16x1xf32>
    %55 = vector.broadcast %54 : vector<16x1xf32> to vector<16x16xf32>
    %56 = arith.subf %52, %55 : vector<16x16xf32>
    %57 = math.exp %56 : vector<16x16xf32>
    %cst_26 = arith.constant dense<0.000000e+00> : vector<16xf32>
    %58 = vector.multi_reduction <add>, %57, %cst_26 [1] : vector<16x16xf32> to vector<16xf32>
    %59 = vector.shape_cast %58 : vector<16xf32> to vector<16x1xf32>
    %60 = tpu.reciprocal %59 {approx = true} : vector<16x1xf32> -> vector<16x1xf32>
    %61 = vector.broadcast %60 : vector<16x1xf32> to vector<16x16xf32>
    %62 = arith.mulf %57, %61 : vector<16x16xf32>
    %63 = arith.truncf %62 : vector<16x16xf32> to vector<16x16xbf16>
    %cst_27 = arith.constant dense<0.000000e+00> : vector<16x32xf32>
    %64 = tpu.matmul %63, %47, %cst_27 {dimension_numbers = #tpu.dot_dimension_numbers<[1], [0], [0], [1], [0, 0, 1, 1], [], []>} : vector<16x16xbf16>, vector<16x32xbf16>, vector<16x32xf32> -> vector<16x32xf32>
    %c0_28 = arith.constant 0 : index
    %c32 = arith.constant 32 : index
    %65 = vector.load %arg12[%c0_28, %c32] : memref<16x128xf32, #tpu.memory_space<vmem>>, vector<16x32xf32>
    tpu.vector_store %arg12[%c0_28, %c32], %64 {strides = array<i32>} : memref<16x128xf32, #tpu.memory_space<vmem>>, vector<16x32xf32>,
    %66 = vector.extract_strided_slice %10 {offsets = [0, 64], sizes = [16, 32], strides = [1, 1]} : vector<16x128xbf16> to vector<16x32xbf16>
    %67 = vector.extract_strided_slice %18 {offsets = [0, 64], sizes = [16, 32], strides = [1, 1]} : vector<16x128xbf16> to vector<16x32xbf16>
    %68 = vector.extract_strided_slice %20 {offsets = [0, 64], sizes = [16, 32], strides = [1, 1]} : vector<16x128xbf16> to vector<16x32xbf16>
    %cst_29 = arith.constant dense<0.000000e+00> : vector<16x16xf32>
    %69 = tpu.matmul %66, %67, %cst_29 {dimension_numbers = #tpu.dot_dimension_numbers<[1], [1], [0], [0], [0, 0, 1, 0], [], []>} : vector<16x32xbf16>, vector<16x32xbf16>, vector<16x16xf32> -> vector<16x16xf32>
    %cst_30 = arith.constant 0.176776692 : f32
    %70 = vector.broadcast %cst_30 : f32 to vector<16x16xf32>
    %71 = arith.mulf %69, %70 : vector<16x16xf32>
    %cst_31 = arith.constant -1.000000e+09 : f32
    %72 = vector.broadcast %cst_31 : f32 to vector<16x16xf32>
    %73 = arith.select %23, %71, %72 : vector<16x16xi1>, vector<16x16xf32>
    %cst_32 = arith.constant dense<0xFF800000> : vector<16xf32>
    %74 = vector.multi_reduction <maximumf>, %73, %cst_32 [1] : vector<16x16xf32> to vector<16xf32>
    %75 = vector.shape_cast %74 : vector<16xf32> to vector<16x1xf32>
    %76 = vector.broadcast %75 : vector<16x1xf32> to vector<16x16xf32>
    %77 = arith.subf %73, %76 : vector<16x16xf32>
    %78 = math.exp %77 : vector<16x16xf32>
    %cst_33 = arith.constant dense<0.000000e+00> : vector<16xf32>
    %79 = vector.multi_reduction <add>, %78, %cst_33 [1] : vector<16x16xf32> to vector<16xf32>
    %80 = vector.shape_cast %79 : vector<16xf32> to vector<16x1xf32>
    %81 = tpu.reciprocal %80 {approx = true} : vector<16x1xf32> -> vector<16x1xf32>
    %82 = vector.broadcast %81 : vector<16x1xf32> to vector<16x16xf32>
    %83 = arith.mulf %78, %82 : vector<16x16xf32>
    %84 = arith.truncf %83 : vector<16x16xf32> to vector<16x16xbf16>
    %cst_34 = arith.constant dense<0.000000e+00> : vector<16x32xf32>
    %85 = tpu.matmul %84, %68, %cst_34 {dimension_numbers = #tpu.dot_dimension_numbers<[1], [0], [0], [1], [0, 0, 1, 1], [], []>} : vector<16x16xbf16>, vector<16x32xbf16>, vector<16x32xf32> -> vector<16x32xf32>
    %c0_35 = arith.constant 0 : index
    %c64 = arith.constant 64 : index
    %86 = vector.load %arg12[%c0_35, %c64] : memref<16x128xf32, #tpu.memory_space<vmem>>, vector<16x32xf32>
    tpu.vector_store %arg12[%c0_35, %c64], %85 {strides = array<i32>} : memref<16x128xf32, #tpu.memory_space<vmem>>, vector<16x32xf32>,
    %87 = vector.extract_strided_slice %10 {offsets = [0, 96], sizes = [16, 32], strides = [1, 1]} : vector<16x128xbf16> to vector<16x32xbf16>
    %88 = vector.extract_strided_slice %18 {offsets = [0, 96], sizes = [16, 32], strides = [1, 1]} : vector<16x128xbf16> to vector<16x32xbf16>
    %89 = vector.extract_strided_slice %20 {offsets = [0, 96], sizes = [16, 32], strides = [1, 1]} : vector<16x128xbf16> to vector<16x32xbf16>
    %cst_36 = arith.constant dense<0.000000e+00> : vector<16x16xf32>
    %90 = tpu.matmul %87, %88, %cst_36 {dimension_numbers = #tpu.dot_dimension_numbers<[1], [1], [0], [0], [0, 0, 1, 0], [], []>} : vector<16x32xbf16>, vector<16x32xbf16>, vector<16x16xf32> -> vector<16x16xf32>
    %cst_37 = arith.constant 0.176776692 : f32
    %91 = vector.broadcast %cst_37 : f32 to vector<16x16xf32>
    %92 = arith.mulf %90, %91 : vector<16x16xf32>
    %cst_38 = arith.constant -1.000000e+09 : f32
    %93 = vector.broadcast %cst_38 : f32 to vector<16x16xf32>
    %94 = arith.select %23, %92, %93 : vector<16x16xi1>, vector<16x16xf32>
    %cst_39 = arith.constant dense<0xFF800000> : vector<16xf32>
    %95 = vector.multi_reduction <maximumf>, %94, %cst_39 [1] : vector<16x16xf32> to vector<16xf32>
    %96 = vector.shape_cast %95 : vector<16xf32> to vector<16x1xf32>
    %97 = vector.broadcast %96 : vector<16x1xf32> to vector<16x16xf32>
    %98 = arith.subf %94, %97 : vector<16x16xf32>
    %99 = math.exp %98 : vector<16x16xf32>
    %cst_40 = arith.constant dense<0.000000e+00> : vector<16xf32>
    %100 = vector.multi_reduction <add>, %99, %cst_40 [1] : vector<16x16xf32> to vector<16xf32>
    %101 = vector.shape_cast %100 : vector<16xf32> to vector<16x1xf32>
    %102 = tpu.reciprocal %101 {approx = true} : vector<16x1xf32> -> vector<16x1xf32>
    %103 = vector.broadcast %102 : vector<16x1xf32> to vector<16x16xf32>
    %104 = arith.mulf %99, %103 : vector<16x16xf32>
    %105 = arith.truncf %104 : vector<16x16xf32> to vector<16x16xbf16>
    %cst_41 = arith.constant dense<0.000000e+00> : vector<16x32xf32>
    %106 = tpu.matmul %105, %89, %cst_41 {dimension_numbers = #tpu.dot_dimension_numbers<[1], [0], [0], [1], [0, 0, 1, 1], [], []>} : vector<16x16xbf16>, vector<16x32xbf16>, vector<16x32xf32> -> vector<16x32xf32>
    %c0_42 = arith.constant 0 : index
    %c96 = arith.constant 96 : index
    %107 = vector.load %arg12[%c0_42, %c96] : memref<16x128xf32, #tpu.memory_space<vmem>>, vector<16x32xf32>
    tpu.vector_store %arg12[%c0_42, %c96], %106 {strides = array<i32>} : memref<16x128xf32, #tpu.memory_space<vmem>>, vector<16x32xf32>,
    %c0_43 = arith.constant 0 : index
    %c0_44 = arith.constant 0 : index
    %108 = vector.load %arg12[%c0_43, %c0_44] : memref<16x128xf32, #tpu.memory_space<vmem>>, vector<16x128xf32>
    %109 = arith.truncf %108 : vector<16x128xf32> to vector<16x128xbf16>
    %c0_45 = arith.constant 0 : index
    %c0_46 = arith.constant 0 : index
    %110 = vector.load %arg7[%c0_45, %c0_46] : memref<128x128xbf16, #tpu.memory_space<vmem>>, vector<128x128xbf16>
    %cst_47 = arith.constant dense<0.000000e+00> : vector<16x128xf32>
    %111 = tpu.matmul %109, %110, %cst_47 {dimension_numbers = #tpu.dot_dimension_numbers<[1], [0], [0], [1], [0, 0, 1, 1], [], []>} : vector<16x128xbf16>, vector<128x128xbf16>, vector<16x128xf32> -> vector<16x128xf32>
    %c0_48 = arith.constant 0 : index
    %c0_49 = arith.constant 0 : index
    %112 = vector.load %arg8[%c0_48, %c0_49] : memref<1x128xf32, #tpu.memory_space<vmem>>, vector<1x128xf32>
    %113 = vector.broadcast %112 : vector<1x128xf32> to vector<16x128xf32>
    %114 = arith.addf %111, %113 : vector<16x128xf32>
    %115 = arith.addf %114, %1 : vector<16x128xf32>
    %cst_50 = arith.constant dense<0.000000e+00> : vector<16xf32>
    %116 = vector.multi_reduction <add>, %115, %cst_50 [1] : vector<16x128xf32> to vector<16xf32>
    %117 = vector.shape_cast %116 : vector<16xf32> to vector<16x1xf32>
    %cst_51 = arith.constant 1.280000e+02 : f32
    %118 = vector.broadcast %cst_51 : f32 to vector<16x1xf32>
    %119 = arith.divf %117, %118 : vector<16x1xf32>
    %120 = arith.mulf %115, %115 : vector<16x128xf32>
    %cst_52 = arith.constant dense<0.000000e+00> : vector<16xf32>
    %121 = vector.multi_reduction <add>, %120, %cst_52 [1] : vector<16x128xf32> to vector<16xf32>
    %122 = vector.shape_cast %121 : vector<16xf32> to vector<16x1xf32>
    %cst_53 = arith.constant 1.280000e+02 : f32
    %123 = vector.broadcast %cst_53 : f32 to vector<16x1xf32>
    %124 = arith.divf %122, %123 : vector<16x1xf32>
    %125 = arith.mulf %119, %119 : vector<16x1xf32>
    %126 = arith.subf %124, %125 : vector<16x1xf32>
    %127 = vector.broadcast %119 : vector<16x1xf32> to vector<16x128xf32>
    %128 = arith.subf %115, %127 : vector<16x128xf32>
    %cst_54 = arith.constant 9.99999997E-7 : f32
    %129 = vector.broadcast %cst_54 : f32 to vector<16x1xf32>
    %130 = arith.addf %126, %129 : vector<16x1xf32>
    %131 = math.rsqrt %130 : vector<16x1xf32>
    %132 = vector.broadcast %131 : vector<16x1xf32> to vector<16x128xf32>
    %133 = arith.mulf %128, %132 : vector<16x128xf32>
    %c0_55 = arith.constant 0 : index
    %c0_56 = arith.constant 0 : index
    %134 = vector.load %arg9[%c0_55, %c0_56] : memref<1x128xf32, #tpu.memory_space<vmem>>, vector<1x128xf32>
    %135 = vector.broadcast %134 : vector<1x128xf32> to vector<16x128xf32>
    %136 = arith.mulf %133, %135 : vector<16x128xf32>
    %c0_57 = arith.constant 0 : index
    %c0_58 = arith.constant 0 : index
    %137 = vector.load %arg10[%c0_57, %c0_58] : memref<1x128xf32, #tpu.memory_space<vmem>>, vector<1x128xf32>
    %138 = vector.broadcast %137 : vector<1x128xf32> to vector<16x128xf32>
    %139 = arith.addf %136, %138 : vector<16x128xf32>
    %c0_59 = arith.constant 0 : index
    %c0_60 = arith.constant 0 : index
    %c0_61 = arith.constant 0 : index
    %140 = vector.load %arg11[%c0_59, %c0_60, %c0_61] : memref<1x16x128xf32, #tpu.memory_space<vmem>>, vector<1x16x128xf32>
    %141 = vector.shape_cast %140 : vector<1x16x128xf32> to vector<16x128xf32>
    %142 = vector.shape_cast %139 : vector<16x128xf32> to vector<1x16x128xf32>
    tpu.vector_store %arg11[%c0_59, %c0_60, %c0_61], %142 {strides = array<i32>} : memref<1x16x128xf32, #tpu.memory_space<vmem>>, vector<1x16x128xf32>,
    return
  }
  func.func @transform_0(%arg0: i32) -> (i32, i32, i32) {
    %c0_i32 = arith.constant 0 : i32
    %c0_i32_0 = arith.constant 0 : i32
    %c0_i32_1 = arith.constant 0 : i32
    return %arg0, %c0_i32, %c0_i32_0 : i32, i32, i32
  }
  func.func @transform_1(%arg0: i32) -> (i32, i32, i32) {
    %c0_i32 = arith.constant 0 : i32
    %c0_i32_0 = arith.constant 0 : i32
    %c0_i32_1 = arith.constant 0 : i32
    return %arg0, %c0_i32, %c0_i32_0 : i32, i32, i32
  }
  func.func @transform_2(%arg0: i32) -> (i32, i32) {
    %c0_i32 = arith.constant 0 : i32
    %c0_i32_0 = arith.constant 0 : i32
    %c0_i32_1 = arith.constant 0 : i32
    return %c0_i32, %c0_i32_0 : i32, i32
  }
  func.func @transform_3(%arg0: i32) -> (i32, i32) {
    %c0_i32 = arith.constant 0 : i32
    %c0_i32_0 = arith.constant 0 : i32
    %c0_i32_1 = arith.constant 0 : i32
    return %c0_i32, %c0_i32_0 : i32, i32
  }
  func.func @transform_4(%arg0: i32) -> (i32, i32) {
    %c0_i32 = arith.constant 0 : i32
    %c0_i32_0 = arith.constant 0 : i32
    %c0_i32_1 = arith.constant 0 : i32
    return %c0_i32, %c0_i32_0 : i32, i32
  }
  func.func @transform_5(%arg0: i32) -> (i32, i32) {
    %c0_i32 = arith.constant 0 : i32
    %c0_i32_0 = arith.constant 0 : i32
    %c0_i32_1 = arith.constant 0 : i32
    return %c0_i32, %c0_i32_0 : i32, i32
  }
  func.func @transform_6(%arg0: i32) -> (i32, i32) {
    %c0_i32 = arith.constant 0 : i32
    %c0_i32_0 = arith.constant 0 : i32
    %c0_i32_1 = arith.constant 0 : i32
    return %c0_i32, %c0_i32_0 : i32, i32
  }
  func.func @transform_7(%arg0: i32) -> (i32, i32) {
    %c0_i32 = arith.constant 0 : i32
    %c0_i32_0 = arith.constant 0 : i32
    %c0_i32_1 = arith.constant 0 : i32
    return %c0_i32, %c0_i32_0 : i32, i32
  }
  func.func @transform_8(%arg0: i32) -> (i32, i32) {
    %c0_i32 = arith.constant 0 : i32
    %c0_i32_0 = arith.constant 0 : i32
    %c0_i32_1 = arith.constant 0 : i32
    return %c0_i32, %c0_i32_0 : i32, i32
  }
  func.func @transform_9(%arg0: i32) -> (i32, i32) {
    %c0_i32 = arith.constant 0 : i32
    %c0_i32_0 = arith.constant 0 : i32
    %c0_i32_1 = arith.constant 0 : i32
    return %c0_i32, %c0_i32_0 : i32, i32
  }
  func.func @transform_10(%arg0: i32) -> (i32, i32, i32) {
    %c0_i32 = arith.constant 0 : i32
    %c0_i32_0 = arith.constant 0 : i32
    %c0_i32_1 = arith.constant 0 : i32
    return %arg0, %c0_i32, %c0_i32_0 : i32, i32, i32
  }
}

</mosaic_0001>

<bundles_post_ra>
// kernel: decoder_layer_forward.5
= control target key start
LH: loop header
LB: loop body
LE: loop exit
PB: predicated region body
PF: predicated region fallthrough
CT: control target
= control target key end

     0   :  { %v627_v2 = vmov 0   ;;  %s810_s0 = inlined_call_operand.vmem [shape: f32[32,128], index: 0, kind: input, shape index: {}]   ;;  %s811_s1 = inlined_call_operand.vmem [shape: bf16[128,256], index: 1, kind: input, shape index: {}]   ;;  %s812_s2 = inlined_call_operand.vmem [shape: f32[1,256], index: 2, kind: input, shape index: {}]   ;;  %s813_s3 = inlined_call_operand.vmem [shape: bf16[256,128], index: 3, kind: input, shape index: {}]   ;;  %s814_s4 = inlined_call_operand.vmem [shape: f32[1,128], index: 4, kind: input, shape index: {}]   ;;  %s815_s5 = inlined_call_operand.vmem [shape: f32[1,128], index: 5, kind: input, shape index: {}]   ;;  %s816_s6 = inlined_call_operand.vmem [shape: f32[1,128], index: 6, kind: input, shape index: {}]   ;;  %s817_s7 = inlined_call_operand.hbm [shape: f32[32,128], index: 7, kind: output, shape index: {}]  }
   0x1   :  { %v557_v0 = vld [vmem:[%s811_s1 + $0x74] ss:$8 sps:$4 sm:$0xff]   ;;  %v559_v1 = vld [vmem:[%s811_s1 + $0x70] ss:$8 sps:$4 sm:$0xff]   ;;  %174 = vmatprep.mubr.bf16.mxu0 %v627_v2  ;;  %v560_v3 = vld [vmem:[%s811_s1 + $0x64] ss:$8 sps:$4 sm:$0xff]  }
   0x2   :  { %142 = vmatprep.subr.bf16.mxu0 %v557_v0  ;;  %v562_v4 = vld [vmem:[%s811_s1 + $0x60] ss:$8 sps:$4 sm:$0xff]   ;;  %v563_v5 = vld [vmem:[%s811_s1 + $0x54] ss:$8 sps:$4 sm:$0xff]   ;;  %v565_v6 = vld [vmem:[%s811_s1 + $0x50] ss:$8 sps:$4 sm:$0xff]  }
   0x3   :  { %143 = vmatpush1.bf16.msra.mxu0 %v559_v1  ;;  %v566_v7 = vld [vmem:[%s811_s1 + $0x44] ss:$8 sps:$4 sm:$0xff]   ;;  %v568_v8 = vld [vmem:[%s811_s1 + $0x40] ss:$8 sps:$4 sm:$0xff]   ;;  %v569_v9 = vld [vmem:[%s811_s1 + $0x34] ss:$8 sps:$4 sm:$0xff]  }
   0x4   :  { %144 = vmatprep.subr.bf16.mxu0 %v560_v3  ;;  %v581_v10 = vld [vmem:[%s813_s3 + $0x78] sm:$0xff]   ;;  %v572_v13 = vld [vmem:[%s811_s1 + $0x24] ss:$8 sps:$4 sm:$0xff]   ;;  %v583_v14 = vld [vmem:[%s813_s3 + $0x70] sm:$0xff]  }
   0x5   :  { %v571_v11 = vld [vmem:[%s811_s1 + $0x30] ss:$8 sps:$4 sm:$0xff]   ;;  %525 = vmatprep.subr.bf16.mxu1 %v581_v10  ;;  %v585_v16 = vld [vmem:[%s813_s3 + $0x68] sm:$0xff]   ;;  %v575_v18 = vld [vmem:[%s811_s1 + $0x14] ss:$8 sps:$4 sm:$0xff]  }
   0x6   :  { %v582_v12 = vld [vmem:[%s813_s3 + $0x38] sm:$0xff]   ;;  %v584_v15 = vld [vmem:[%s813_s3 + $0x30] sm:$0xff]   ;;  %v574_v17 = vld [vmem:[%s811_s1 + $0x20] ss:$8 sps:$4 sm:$0xff]  }
   0x7   :  { %145 = vmatpush1.bf16.msra.mxu0 %v562_v4  ;;  %526 = vmatpush3.bf16.msra.mxu1 %v582_v12  ;;  %v586_v19 = vld [vmem:[%s813_s3 + $0x28] sm:$0xff]   ;;  %v587_v20 = vld [vmem:[%s813_s3 + $0x60] sm:$0xff]   ;;  %v577_v21 = vld [vmem:[%s811_s1 + $0x10] ss:$8 sps:$4 sm:$0xff]  }
   0x8   :  { %146 = vmatprep.subr.bf16.mxu0 %v563_v5  ;;  %527 = vmatprep.subr.bf16.mxu1 %v583_v14  ;;  %v588_v22 = vld [vmem:[%s813_s3 + $0x20] sm:$0xff]   ;;  %v589_v24 = vld [vmem:[%s813_s3 + $0x58] sm:$0xff]  }
   0x9   :  { %v578_v23 = vld [vmem:[%s811_s1 + $0x4] ss:$8 sps:$4 sm:$0xff]   ;;  %v580_v25 = vld [vmem:[%s811_s1] ss:$8 sps:$4 sm:$0xff]  }
   0xb   :  { %147 = vmatpush1.bf16.msra.mxu0 %v565_v6  ;;  %528 = vmatpush3.bf16.msra.mxu1 %v584_v15 }
   0xc   :  { %148 = vmatprep.subr.bf16.mxu0 %v566_v7  ;;  %529 = vmatprep.subr.bf16.mxu1 %v585_v16 }
   0xf   :  { %149 = vmatpush1.bf16.msra.mxu0 %v568_v8  ;;  %530 = vmatpush3.bf16.msra.mxu1 %v586_v19 }
  0x10   :  { %150 = vmatprep.subr.bf16.mxu0 %v569_v9  ;;  %531 = vmatprep.subr.bf16.mxu1 %v587_v20 }
  0x13   :  { %151 = vmatpush1.bf16.msra.mxu0 %v571_v11 }
  0x14   :  { %152 = vmatprep.subr.bf16.mxu0 %v572_v13 }
  0x17   :  { %153 = vmatpush1.bf16.msra.mxu0 %v574_v17 }
  0x18   :  { %154 = vmatprep.subr.bf16.mxu0 %v575_v18 }
  0x19   :  { %12 = vsyncpa [#allocation3], 0  ;;  %v749_v26 = vld [vmem:[%s810_s0] sm:$0xff]  ;;  %v754_v27 = vld [vmem:[%s810_s0 + $0x8] sm:$0xff]  ;;  %532 = vmatpush3.bf16.msra.mxu1 %v588_v22  ;;  %v52_v39 = vlaneseq }
  0x1a   :  { %v590_v28 = vld [vmem:[%s813_s3 + $0x18] sm:$0xff]   ;;  %533 = vmatprep.subr.bf16.mxu1 %v589_v24  ;;  %v32_v29 = vpack.c.bf16 %v754_v27, %v749_v26  ;;  %v764_v30 = vld [vmem:[%s810_s0 + $0x10] sm:$0xff]  ;;  %v593_v35 = vld [vmem:[%s813_s3 + $0x48] sm:$0xff]  }
  0x1b   :  { %155 = vmatpush1.bf16.msra.mxu0 %v577_v21  ;;  %v769_v31 = vld [vmem:[%s810_s0 + $0x18] sm:$0xff]  ;;  %v591_v33 = vld [vmem:[%s813_s3 + $0x50] sm:$0xff]   ;;  %v594_v36 = vld [vmem:[%s813_s3 + $0x8] sm:$0xff]   ;;  %v53_v40 = vshrl.u32 %v52_v39, 7 }
  0x1c   :  { %156 = vmatprep.subr.bf16.mxu0 %v578_v23  ;;  %v33_v32 = vpack.c.bf16 %v769_v31, %v764_v30  ;;  %v592_v34 = vld [vmem:[%s813_s3 + $0x10] sm:$0xff]   ;;  %v595_v37 = vld [vmem:[%s813_s3 + $0x40] sm:$0xff]  }
  0x1d   :  { %534 = vmatpush3.bf16.msra.mxu1 %v590_v28  ;;  %v596_v38 = vld [vmem:[%s813_s3] sm:$0xff]   ;;  %v58_v41 = vsub.s32 1, %v53_v40  ;;  %v54_v42 = vsub.s32 0, %v53_v40 }
  0x1e   :  { %535 = vmatprep.subr.bf16.mxu1 %v591_v33  ;;  %v50_v43 = vld [vmem:[%s812_s2] sm:$0x3] }
  0x1f   :  { %157 = vmatpush1.bf16.msra.mxu0 %v580_v25  ;;  %v59_v45 = vrot.slane %v50_v43, %v58_v41  ;;  %v55_v46 = vrot.slane %v50_v43, %v54_v42  ;;  %v506_v11 = vld [vmem:[%s814_s4] ss:$0 sm:$0xff] }
  0x21   :  { %536 = vmatpush3.bf16.msra.mxu1 %v592_v34 }
  0x22   :  { %175 = vmatmul.mubr.bf16.vlgmr.msra.gmra.mxu0 %v32_v29  ;;  %537 = vmatprep.subr.bf16.mxu1 %v593_v35 }
  0x23   :  { %184 = vmatprep.mubr.bf16.mxu0 %v627_v2 }
  0x25   :  { %538 = vmatpush3.bf16.msra.mxu1 %v594_v36 }
  0x26   :  { %539 = vmatprep.subr.bf16.mxu1 %v595_v37 }
  0x29   :  { %540 = vmatpush3.bf16.msra.mxu1 %v596_v38 }
  0x2a   :  { %185 = vmatmul.mubr.bf16.gmra.mxu0 %v33_v32 }
  0xe2   :  { %v176_v44 = vpop.f32.mrf.mxu0 }
  0xe3   :  { %v177_v51 = vadd.f32 %v176_v44, %v55_v46 }
  0xe4   :  { %v178_v47 = vpop.f32.mrf.mxu0 }
  0xe5   :  { %v179_v49 = vadd.f32 %v178_v47, %v59_v45  ;;  %v195_v58 = vmax.f32 %v177_v51, 0.0 }
  0xe6   :  { %v180_v48 = vpop.f32.mrf.mxu0 }
  0xe7   :  { %v181_v50 = vadd.f32 %v180_v48, %v55_v46  ;;  %v196_v56 = vmax.f32 %v179_v49, 0.0 }
  0xe8   :  { %v182_v52 = vpop.f32.mrf.mxu0 }
  0xe9   :  { %v183_v53 = vadd.f32 %v182_v52, %v59_v45  ;;  %v197_v54 = vmax.f32 %v181_v50, 0.0 }
  0xea   :  { %v186_v55 = vpop.f32.mrf.mxu0 }
  0xeb   :  { %v198_v57 = vmax.f32 %v183_v53, 0.0  ;;  %v203_v61 = vpack.c.bf16 %v197_v54, %v195_v58  ;;  %v187_v1 = vadd.f32 %v186_v55, %v55_v46 }
  0xec   :  { %v188_v59 = vpop.f32.mrf.mxu0 }
  0xed   :  { %v204_v60 = vpack.c.bf16 %v198_v57, %v196_v56  ;;  %v189_v63 = vadd.f32 %v188_v59, %v59_v45  ;;  %v199_v7 = vmax.f32 %v187_v1, 0.0  ;;  %v523_v1 = vld [vmem:[%s815_s5] ss:$0 sm:$0xff]  ;;  %s628_s5 = smov [#allocation2]  }
  0xee   :  { %v190_v62 = vpop.f32.mrf.mxu0 }
  0xef   :  { %v191_v0 = vadd.f32 %v190_v62, %v55_v46  ;;  %374 = vmatprep.mubr.bf16.mxu1 %v204_v60  ;;  %v200_v5 = vmax.f32 %v189_v63, 0.0 }
  0xf0   :  { %v192_v2 = vpop.f32.mrf.mxu0  ;;  %375 = vmatmul.mubr.bf16.vlgmr.msra.gmra.mxu1 %v203_v61 }
  0xf1   :  { %v193_v3 = vadd.f32 %v192_v2, %v59_v45  ;;  %v201_v4 = vmax.f32 %v191_v0, 0.0 }
  0xf3   :  { %v202_v6 = vmax.f32 %v193_v3, 0.0  ;;  %v205_v9 = vpack.c.bf16 %v201_v4, %v199_v7  ;;  %v524_v3 = vld [vmem:[%s816_s6] ss:$0 sm:$0xff]  ;;  %s479_s6 = sshll.u32 %s628_s5, 4  ;;  %s480_s6 = int_to_ptr.vmem [resolvable:$true] %s479_s6 }
  0xf4   :  { %s605_s30 = scalar_lea.vmem %s480_s6, 512  ;;  %p610_p1 = scmp.lt.s32.totalorder %s480_s6, %s480_s6 }
  0xf5   :  { %v206_v8 = vpack.c.bf16 %v202_v6, %v200_v5  ;;  %p606_p0 = scmp.ne.s32.totalorder %s480_s6, %s605_s30  ;;  %p611_p2 = scmp.lt.s32.totalorder %s605_s30, %s605_s30 }
  0xf7   :  { %382 = vmatprep.mubr.bf16.mxu1 %v206_v8  ;;  %p612_p3 = por %p611_p2, %p610_p1 }
  0xf8   :  { %383 = vmatmul.mubr.bf16.gmra.mxu1 %v205_v9 }
  0xf9   :  { %p613_p4 = pnand %p612_p3, %p606_p0 }
 0x1b0   :  { %v541_v10 = vpop.f32.mrf.mxu1 }
 0x1b2   :  { %v542_v12 = vpop.f32.mrf.mxu1 }
 0x1b3   :  { %v543_v13 = vadd.f32 %v542_v12, %v541_v10 }
 0x1b4   :  { %v544_v14 = vpop.f32.mrf.mxu1 }
 0x1b5   :  { %v377_v15 = vadd.f32 %v543_v13, %v506_v11 }
 0x1b6   :  { %v545_v16 = vpop.f32.mrf.mxu1 }
 0x1b7   :  { %v546_v17 = vadd.f32 %v545_v16, %v544_v14  ;;  %v391_v18 = vadd.f32 %v377_v15, %v749_v26 }
 0x1b8   :  { %v547_v19 = vpop.f32.mrf.mxu1 }
 0x1b9   :  { %v380_v20 = vadd.f32 %v546_v17, %v506_v11  ;;  %395 = vadd.xlane.f32.xlu0 %v391_v18  ;;  %v408_v23 = vmul.f32 %v391_v18, %v391_v18 }
 0x1ba   :  { %v548_v21 = vpop.f32.mrf.mxu1 }
 0x1bb   :  { %v549_v22 = vadd.f32 %v548_v21, %v547_v19  ;;  %v392_v24 = vadd.f32 %v380_v20, %v754_v27 }
 0x1bc   :  { %v550_v25 = vpop.f32.mrf.mxu1 }
 0x1bd   :  { %v385_v28 = vadd.f32 %v549_v22, %v506_v11  ;;  %412 = vadd.xlane.f32.xlu0 %v408_v23  ;;  %v409_v29 = vmul.f32 %v392_v24, %v392_v24 }
 0x1be   :  { %v551_v32 = vpop.f32.mrf.mxu1 }
 0x1bf   :  { %v552_v33 = vadd.f32 %v551_v32, %v550_v25  ;;  %414 = vadd.xlane.f32.xlu1 %v409_v29  ;;  %v393_v34 = vadd.f32 %v385_v28, %v764_v30 }
 0x1c1   :  { %v388_v35 = vadd.f32 %v552_v33, %v506_v11  ;;  %397 = vadd.xlane.f32.xlu0 %v392_v24  ;;  %v410_v26 = vmul.f32 %v393_v34, %v393_v34 }
 0x1c3   :  { %399 = vadd.xlane.f32.xlu1 %v393_v34  ;;  %v394_v36 = vadd.f32 %v388_v35, %v769_v31 }
 0x1c5   :  { %416 = vadd.xlane.f32.xlu0 %v410_v26  ;;  %v411_v37 = vmul.f32 %v394_v36, %v394_v36 }
 0x1c7   :  { %401 = vadd.xlane.f32.xlu1 %v394_v36 }
 0x1cb   :  { %418 = vadd.xlane.f32.xlu1 %v411_v37 }
 0x242   :  { %v396_v27 = vpop.xlane.xlu0 %395 }
 0x243   :  { %v404_v38 = vmul.f32 0.0078125, %v396_v27 }
 0x245   :  { %v424_v40 = vmul.f32 %v404_v38, %v404_v38  ;;  %v432_v62 = vsub.f32 %v391_v18, %v404_v38 }
 0x246   :  { %v413_v39 = vpop.xlane.xlu0 %412 }
 0x247   :  { %v420_v41 = vmul.f32 0.0078125, %v413_v39 }
 0x248   :  { %v415_v42 = vpop.xlane.xlu1 %414 }
 0x249   :  { %v428_v43 = vsub.f32 %v420_v41, %v424_v40  ;;  %v421_v47 = vmul.f32 0.0078125, %v415_v42 }
 0x24a   :  { %v398_v44 = vpop.xlane.xlu0 %397 }
 0x24b   :  { %v436_v45 = vadd.f32 1e-06, %v428_v43  ;;  %v405_v30 = vmul.f32 0.0078125, %v398_v44 }
 0x24c   :  { %v400_v46 = vpop.xlane.xlu1 %399 }
 0x24d   :  { %597 = vrsqrt.f32 %v436_v45  ;;  %v425_v48 = vmul.f32 %v405_v30, %v405_v30  ;;  %v406_v49 = vmul.f32 0.0078125, %v400_v46  ;;  %v433_v5 = vsub.f32 %v392_v24, %v405_v30 }
 0x24e   :  { %v417_v50 = vpop.xlane.xlu0 %416 }
 0x24f   :  { %v429_v31 = vsub.f32 %v421_v47, %v425_v48  ;;  %v426_v51 = vmul.f32 %v406_v49, %v406_v49  ;;  %v422_v52 = vmul.f32 0.0078125, %v417_v50  ;;  %v434_v9 = vsub.f32 %v393_v34, %v406_v49 }
 0x250   :  { %v402_v53 = vpop.xlane.xlu1 %401 }
 0x251   :  { %v437_v54 = vadd.f32 1e-06, %v429_v31  ;;  %v430_v55 = vsub.f32 %v422_v52, %v426_v51  ;;  %v407_v56 = vmul.f32 0.0078125, %v402_v53 }
 0x253   :  { %599 = vrsqrt.f32 %v437_v54  ;;  %v438_v57 = vadd.f32 1e-06, %v430_v55  ;;  %v427_v59 = vmul.f32 %v407_v56, %v407_v56  ;;  %v435_v15 = vsub.f32 %v394_v36, %v407_v56 }
 0x254   :  { %v419_v58 = vpop.xlane.xlu1 %418 }
 0x255   :  { %601 = vrsqrt.f32 %v438_v57  ;;  %v423_v60 = vmul.f32 0.0078125, %v419_v58 }
 0x257   :  { %v431_v61 = vsub.f32 %v423_v60, %v427_v59 }
 0x259   :  { %v439_v63 = vadd.f32 1e-06, %v431_v61 }
 0x25a   :  { %v598_v0 = vpop.eup %597 }
 0x25b   :  { %v444_v2 = vmul.f32 %v598_v0, %v432_v62  ;;  %603 = vrsqrt.f32 %v439_v63 }
 0x25d   :  { %v455_v4 = vmul.f32 %v523_v1, %v444_v2 }
 0x25f   :  { %v466_v6 = vadd.f32 %v524_v3, %v455_v4 }
 0x260   :  { %v600_v7 = vpop.eup %599 }
 0x261   :  { %v445_v8 = vmul.f32 %v600_v7, %v433_v5  ;;  %470 = vst [vmem:[#allocation2] sm:$0xff] %v466_v6 }
 0x262   :  { %v602_v10 = vpop.eup %601 }
 0x263   :  { %v456_v11 = vmul.f32 %v523_v1, %v445_v8  ;;  %v446_v12 = vmul.f32 %v602_v10, %v434_v9 }
 0x265   :  { %v467_v13 = vadd.f32 %v524_v3, %v456_v11  ;;  %v457_v14 = vmul.f32 %v523_v1, %v446_v12 }
 0x267   :  { %471 = vst [vmem:[#allocation2 + $0x8] sm:$0xff] %v467_v13  ;;  %v468_v16 = vadd.f32 %v524_v3, %v457_v14 }
 0x268   :  { %v604_v17 = vpop.eup %603 }
 0x269   :  { %v447_v18 = vmul.f32 %v604_v17, %v435_v15  ;;  %472 = vst [vmem:[#allocation2 + $0x10] sm:$0xff] %v468_v16 }
 0x26b   :  { %v458_v19 = vmul.f32 %v523_v1, %v447_v18 }
 0x26d   :  { %v469_v20 = vadd.f32 %v524_v3, %v458_v19 }
 0x26f   :  { %473 = vst [vmem:[#allocation2 + $0x18] sm:$0xff] %v469_v20 }
 0x270   :  { %616 = shalt.err (!%p613_p4)
}
 0x271   :  { %s629_s8 = smov 128   ;;  %s630_s9 = smov 8  }
 0x272   :  { %485 = dma.vmem_to_hbm [thread:$0]  %s480_s6, 512, %s817_s7, [#allocation3], %s629_s8, %s629_s8, %s630_s9  }
 0x273   :  { %625 = dma.done.wait [#allocation3], 512  }
 0x274   :  { %626 = vsyncadd [#allocation3], 4294966784 }
 0x275   :  { %489 = vsyncpa [#allocation3], 1 }

// kernel: decoder_layer_forward.3
= control target key start
LH: loop header
LB: loop body
LE: loop exit
PB: predicated region body
PF: predicated region fallthrough
CT: control target
= control target key end

     0   :  { %15 = vsyncpa [#allocation4], 0  ;;  %s2217_s0 = inlined_call_operand.vmem [shape: f32[2,16,128], index: 0, kind: input, shape index: {}, may-alias: {0,1}]   ;;  %s2218_s1 = inlined_call_operand.vmem [shape: f32[2,16,128], index: 1, kind: input, shape index: {}, may-alias: {0,1}]   ;;  %s2219_s2 = inlined_call_operand.hbm [shape: bf16[128,128], index: 2, kind: input, shape index: {}]   ;;  %s2220_s3 = inlined_call_operand.vmem [shape: f32[1,128], index: 3, kind: input, shape index: {}]   ;;  %s2221_s4 = inlined_call_operand.hbm [shape: bf16[128,256], index: 4, kind: input, shape index: {}]   ;;  %s2222_s5 = inlined_call_operand.vmem [shape: f32[1,256], index: 5, kind: input, shape index: {}]   ;;  %s2223_s6 = inlined_call_operand.hbm [shape: bf16[128,128], index: 6, kind: input, shape index: {}]   ;;  %s2224_s7 = inlined_call_operand.vmem [shape: f32[1,128], index: 7, kind: input, shape index: {}]   ;;  %s2225_s8 = inlined_call_operand.vmem [shape: f32[1,128], index: 8, kind: input, shape index: {}]   ;;  %s2226_s9 = inlined_call_operand.vmem [shape: f32[1,128], index: 9, kind: input, shape index: {}]   ;;  %s2227_s10 = inlined_call_operand.vmem [shape: f32[2,16,128], index: 10, kind: output, shape index: {}]  }
   0x1   :  { %16 = vsyncpa [#allocation6], 0  ;;  %s1974_s13 = smov 0  }
   0x2 LB: > { %s1906_s14 = smov [#allocation5]   ;;  %s1980_s16 = sadd.s32 4294967295, %s1904_s13   ;;  %s1904_s13 = sphi %s1974_s13, %s22_s13  }
   0x3   : > { %s301_s15 = sshll.u32 %s1906_s14, 4  ;;  %p1501_p0 = scmp.ge.s32.totalorder %s1904_s13, 1  ;;  %s302_s15 = int_to_ptr.vmem [resolvable:$true] %s301_s15 }
   0x4   : > { %p273_p1 = scmp.lt.s32.totalorder %s1904_s13, 3  ;;  %p1709_p2 = scmp.eq.s32.totalorder %s1980_s16, 0 }
   0x5   : > { %s1907_s18 = smov [#allocation3]   ;;  %s1908_s21 = smov [#allocation7]  }
   0x6   : > { %p1985_p3 = pnand %p1501_p0, %p273_p1  ;;  %s285_s19 = sshll.u32 %s1907_s18, 4  ;;  %s1991_s19 = int_to_ptr.vmem [resolvable:$true] %s285_s19 }
   0x7   : > { %s1999_s22 = sshll.u32 %s1908_s21, 4  ;;  %s1823_s23 = scalar_lea.vmem %s302_s15, 2048  ;;  %s318_s22 = int_to_ptr.vmem [resolvable:$true] %s1999_s22 }
   0x8   : > { %p1699_p4 = pneg %p1985_p3  ;;  %p1824_p7 = scmp.ne.s32.totalorder %s302_s15, %s1823_s23 }
   0x9   : > { %p1831_p10 = scmp.lt.s32.totalorder %s302_s15, %s302_s15  ;;  %p1832_p11 = scmp.lt.s32.totalorder %s1823_s23, %s1823_s23 }
   0xa   : > { %p1995_p5 = pnand %p1709_p2, %p1699_p4 }
   0xb   : > { %p1833_p12 = por %p1832_p11, %p1831_p10 }
   0xc   : > { %p1814_p6 = pneg %p1995_p5 }
   0xe   : > { %p1826_p8 = pnand %p1824_p7, %p1814_p6 }
  0x10   : > { %p1827_p9 = pneg %p1826_p8 }
  0x12   : > { %p1834_p13 = pnand %p1833_p12, %p1827_p9 }
  0x14   : > { %1837 = shalt.err (!%p1834_p13)
}
  0x15   : > { %s1909_s24 = smov 128   ;;  %s1910_s25 = smov 8  }
  0x16   : > { %1705 = dma.hbm_to_vmem [thread:$0]  (!%p1995_p5), %s2221_s4, 2048, %s302_s15, [#allocation6], %s1909_s24, %s1909_s24, %s1910_s25  }
  0x17   : > { %s1849_s28 = scalar_lea.vmem %s1991_s19, 1024  ;;  %p1857_p7 = scmp.lt.s32.totalorder %s1991_s19, %s1991_s19 }
  0x18   : > { %p1850_p0 = scmp.ne.s32.totalorder %s1991_s19, %s1849_s28  ;;  %p1858_p8 = scmp.lt.s32.totalorder %s1849_s28, %s1849_s28 }
  0x1a   : > { %p1852_p1 = pnand %p1850_p0, %p1814_p6  ;;  %p1859_p9 = por %p1858_p8, %p1857_p7 }
  0x1c   : > { %p1853_p4 = pneg %p1852_p1 }
  0x1e   : > { %p1860_p10 = pnand %p1859_p9, %p1853_p4 }
  0x20   : > { %1863 = shalt.err (!%p1860_p10)
}
  0x21   : > { %s1911_s29 = smov 64   ;;  %s1912_s30 = smov 4  }
  0x22   : > { %1702 = dma.hbm_to_vmem [thread:$0]  (!%p1995_p5), %s2219_s2, 1024, %s1991_s19, [#allocation4], %s1911_s29, %s1911_s29, %s1912_s30  }
  0x23   : > { %s1875_s14 = scalar_lea.vmem %s318_s22, 1024  ;;  %p1883_p0 = scmp.lt.s32.totalorder %s318_s22, %s318_s22 }
  0x24   : > { %p1876_p11 = scmp.ne.s32.totalorder %s318_s22, %s1875_s14  ;;  %p1884_p1 = scmp.lt.s32.totalorder %s1875_s14, %s1875_s14 }
  0x26   : > { %p1878_p12 = pnand %p1876_p11, %p1814_p6  ;;  %p1885_p4 = por %p1884_p1, %p1883_p0 }
  0x28   : > { %p1879_p13 = pneg %p1878_p12 }
  0x2a   : > { %p1886_p7 = pnand %p1885_p4, %p1879_p13 }
  0x2c   : > { %1889 = shalt.err (!%p1886_p7)
}
  0x2d   : > { %1708 = dma.hbm_to_vmem [thread:$0]  (!%p1995_p5), %s2223_s6, 1024, %s318_s22, [#allocation6], %s1911_s29, %s1911_s29, %s1912_s30  }
  0x2e   : > { %358 = sbr.rel (%p1985_p3) target bundleno = 2056 (0x808), region = 60 }
  0x33   : > { %1895 = dma.done.wait (%p1709_p2), [#allocation4], 1024  }
  0x34   : > { %1897 = vsyncadd (%p1709_p2), [#allocation4], 4294966272 }
  0x35   : > { %1899 = dma.done.wait (%p1709_p2), [#allocation6], 3072  }
  0x36   : > { %1901 = vsyncadd (%p1709_p2), [#allocation6], 4294964224  ;;  %v1913_v0 = vmov 0.0   ;;  %v1914_v1 = vmov 0   ;;  %vm1915_vm0 = vmmov 0   ;;  %v1739_v4 = vld [vmem:[#allocation3 + $0x38] sm:$0xff]   ;;  %v562_v32 = vlaneseq }
  0x37   : > { %1599 = vmatprep.subr.bf16.mxu0 %v1913_v0  ;;  %684 = vmatprep.mubr.bf16.mxu1 %v1914_v1  ;;  %v1736_v2 = vld [vmem:[#allocation5 + $0x74] ss:$8 sps:$4 sm:$0xff]   ;;  %v1738_v3 = vld [vmem:[#allocation5 + $0x70] ss:$8 sps:$4 sm:$0xff]   ;;  %v1740_v5 = vld [vmem:[#allocation5 + $0x64] ss:$8 sps:$4 sm:$0xff]  }
  0x38   : > { %1615 = vmatprep.mubr.msk.bf16.mxu0 %vm1915_vm0, %v1913_v0  ;;  %652 = vmatprep.subr.bf16.mxu1 %v1736_v2  ;;  %v1742_v6 = vld [vmem:[#allocation5 + $0x60] ss:$8 sps:$4 sm:$0xff]   ;;  %v1743_v7 = vld [vmem:[#allocation3 + $0x30] sm:$0xff]   ;;  %v1748_v11 = vld [vmem:[#allocation5 + $0x44] ss:$8 sps:$4 sm:$0xff]   ;;  %p409_p2 = scmp.lt.s32.totalorder %s1980_s16, 1 }
  0x39   : > { %653 = vmatpush1.bf16.msra.mxu1 %v1738_v3  ;;  %1600 = vmatpush3.bf16.msra.mxu0 %v1739_v4  ;;  %v1744_v8 = vld [vmem:[#allocation5 + $0x54] ss:$8 sps:$4 sm:$0xff]   ;;  %v1746_v9 = vld [vmem:[#allocation5 + $0x50] ss:$8 sps:$4 sm:$0xff]   ;;  %v1747_v10 = vld [vmem:[#allocation3 + $0x28] sm:$0xff]   ;;  %v2077_v33 = vshrl.u32 %v562_v32, 7 }
  0x3a   : > { %654 = vmatprep.subr.bf16.mxu1 %v1740_v5  ;;  %1601 = vmatprep.subr.bf16.mxu0 %v1913_v0  ;;  %v1750_v12 = vld [vmem:[#allocation5 + $0x40] ss:$8 sps:$4 sm:$0xff]   ;;  %v1752_v14 = vld [vmem:[#allocation5 + $0x34] ss:$8 sps:$4 sm:$0xff]   ;;  %v1754_v15 = vld [vmem:[#allocation5 + $0x30] ss:$8 sps:$4 sm:$0xff]  }
  0x3b   : > { %v1751_v13 = vld [vmem:[#allocation3 + $0x20] sm:$0xff]   ;;  %v1755_v16 = vld [vmem:[#allocation3 + $0x18] sm:$0xff]   ;;  %s2231_s16 = smov (!%p409_p2, %s1980_s16), 1  ;;  %v1759_v19 = vld [vmem:[#allocation3 + $0x10] sm:$0xff]   ;;  %v564_v34 = vsub.s32 0, %v2077_v33  ;;  %v568_v45 = vsub.s32 1, %v2077_v33 }
  0x3c   : > { %v1756_v17 = vld [vmem:[#allocation5 + $0x24] ss:$8 sps:$4 sm:$0xff]   ;;  %v1758_v18 = vld [vmem:[#allocation5 + $0x20] ss:$8 sps:$4 sm:$0xff]   ;;  %s2052_s17 = sshll.u32 %s2231_s16, 4  ;;  %vm704_vm1 = vcmask 261120  }
  0x3d   : > { %655 = vmatpush1.bf16.msra.mxu1 %v1742_v6  ;;  %1602 = vmatpush3.bf16.msra.mxu0 %v1743_v7  ;;  %v1760_v20 = vld [vmem:[#allocation5 + $0x14] ss:$8 sps:$4 sm:$0xff]   ;;  %v1762_v21 = vld [vmem:[#allocation5 + $0x10] ss:$8 sps:$4 sm:$0xff]   ;;  %v1763_v22 = vld [vmem:[#allocation3 + $0x8] sm:$0xff]   ;;  %s418_s21 = scalar_lea.vmem %s2218_s1, %s2052_s17  ;;  %s413_s23 = scalar_lea.vmem %s2217_s0, %s2052_s17  ;;  %v2096_v58 = vand.u32 127, %v562_v32 }
  0x3e   : > { %656 = vmatprep.subr.bf16.mxu1 %v1744_v8  ;;  %1603 = vmatprep.subr.bf16.mxu0 %v1913_v0  ;;  %v1764_v23 = vld [vmem:[#allocation5 + $0x4] ss:$8 sps:$4 sm:$0xff]   ;;  %v1766_v24 = vld [vmem:[#allocation5] ss:$8 sps:$4 sm:$0xff]   ;;  %v427_v25 = vld [vmem:[%s418_s21] sm:$0xff]  ;;  %v2101_v60 = vadd.s32 8, %v2077_v33  ;;  %s423_s16 = scalar_lea.vmem %s2227_s10, %s2052_s17 }
  0x3f   : > { %v428_v26 = vld [vmem:[%s418_s21 + $0x8] sm:$0xff]  ;;  %v1767_v27 = vld [vmem:[#allocation3] sm:$0xff]   ;;  %v2064_v28 = vld [vmem:[%s413_s23] sm:$0xff]  ;;  %vm702_vm2 = vcmp.ge.s32.totalorder %v2077_v33, %v2096_v58  ;;  %vm756_vm3 = vcmask 130048   ;;  %s1916_s28 = smov 96   ;;  %s1917_s29 = smov 32  }
  0x40   : > { %v2066_v29 = vld [vmem:[%s413_s23 + $0x8] sm:$0xff]  ;;  %v543_v30 = vpack.c.bf16 %v428_v26, %v427_v25  ;;  %v560_v35 = vld [vmem:[%s2222_s5] sm:$0x3]  ;;  %vm703_vm4 = vcmp.ge.s32.totalorder %v2101_v60, %v2096_v58  ;;  %s1918_s30 = smov 64   ;;  %vm962_vm5 = vcmask 523520   ;;  %vm1098_vm6 = vcmask 785920  }
  0x41   : > { %657 = vmatpush1.bf16.msra.mxu1 %v1746_v9  ;;  %1604 = vmatpush3.bf16.msra.mxu0 %v1747_v10  ;;  %v429_v31 = vpack.c.bf16 %v2066_v29, %v2064_v28  ;;  %v565_v37 = vrot.slane %v560_v35, %v564_v34  ;;  %v1516_v48 = vld [vmem:[%s2220_s3] ss:$0 sm:$0xff]  ;;  %v569_v51 = vrot.slane %v560_v35, %v568_v45  ;;  %vm1234_vm7 = vcmask 1048320  }
  0x42   : > { %658 = vmatprep.subr.bf16.mxu1 %v1748_v11  ;;  %1605 = vmatprep.subr.bf16.mxu0 %v1913_v0 }
  0x45   : > { %659 = vmatpush1.bf16.msra.mxu1 %v1750_v12  ;;  %1606 = vmatpush3.bf16.msra.mxu0 %v1751_v13 }
  0x46   : > { %660 = vmatprep.subr.bf16.mxu1 %v1752_v14  ;;  %1607 = vmatprep.subr.bf16.mxu0 %v1913_v0 }
  0x49   : > { %661 = vmatpush1.bf16.msra.mxu1 %v1754_v15  ;;  %1608 = vmatpush3.bf16.msra.mxu0 %v1755_v16 }
  0x4a   : > { %662 = vmatprep.subr.bf16.mxu1 %v1756_v17  ;;  %1609 = vmatprep.subr.bf16.mxu0 %v1913_v0 }
  0x4d   : > { %663 = vmatpush1.bf16.msra.mxu1 %v1758_v18  ;;  %1610 = vmatpush3.bf16.msra.mxu0 %v1759_v19 }
  0x4e   : > { %664 = vmatprep.subr.bf16.mxu1 %v1760_v20  ;;  %1611 = vmatprep.subr.bf16.mxu0 %v1913_v0 }
  0x51   : > { %665 = vmatpush1.bf16.msra.mxu1 %v1762_v21  ;;  %1612 = vmatpush3.bf16.msra.mxu0 %v1763_v22 }
  0x52   : > { %666 = vmatprep.subr.bf16.mxu1 %v1764_v23  ;;  %1613 = vmatprep.subr.bf16.mxu0 %v1913_v0 }
  0x55   : > { %667 = vmatpush1.bf16.msra.mxu1 %v1766_v24  ;;  %1614 = vmatpush3.bf16.msra.mxu0 %v1767_v27 }
  0x56   : > { %1619 = vmatprep.subr.bf16.mxu1 %v1913_v0  ;;  %1643 = vmatprep.subr.bf16.mxu0 %v1913_v0 }
  0x58   : > { %685 = vmatmul.mubr.bf16.vlgmr.msra.gmra.mxu1 %v543_v30  ;;  %1616 = vmatmul.mubr.bf16.vlgmr.msra.gmra.mxu0 %v429_v31 }
  0x59   : > { %1621 = vmatprep.mubr.msk.bf16.mxu1 %vm1915_vm0, %v1913_v0  ;;  %1645 = vmatprep.mubr.msk.bf16.mxu0 %vm1915_vm0, %v1913_v0 }
 0x118   : > { %v686_v36 = vpop.f32.mrf.mxu1  ;;  %v535_v38 = vpop.f32.mrf.mxu0 }
 0x119   : > { %v687_v42 = vadd.f32 %v686_v36, %v565_v37  ;;  %v536_v52 = vadd.f32 %v1516_v48, %v535_v38 }
 0x11a   : > { %v688_v39 = vpop.f32.mrf.mxu1  ;;  %v1617_v40 = vpop.f32.mrf.mxu0 }
 0x11b   : > { %v689_v55 = vadd.f32 %v688_v39, %v569_v51 }
 0x11c   : > { %v690_v41 = vpop.f32.mrf.mxu1  ;;  %v538_v44 = vpop.f32.mrf.mxu0 }
 0x11d   : > { %v691_v43 = vadd.f32 %v690_v41, %v565_v37  ;;  %v539_v53 = vadd.f32 %v1516_v48, %v538_v44 }
 0x11e   : > { %v1618_v47 = vpop.f32.mrf.mxu0  ;;  %v692_v49 = vpop.f32.mrf.mxu1 }
 0x11f   : > { %v695_v46 = vpack.c.bf16 %v691_v43, %v687_v42  ;;  %v693_v54 = vadd.f32 %v692_v49, %v569_v51  ;;  %v542_v56 = vpack.c.bf16 %v539_v53, %v536_v52 }
 0x121   : > { %v709_v50 = vsel %vm704_vm1, %v695_v46, 0  ;;  %v2089_v57 = vpack.c.bf16 %v693_v54, %v689_v55 }
 0x122   : > { %1620 = vmatpush3.bf16.xpose.msra.mxu1 %v709_v50 }
 0x123   : > { %1625 = vmatprep.subr.bf16.mxu1 %v1913_v0 }
 0x129   : > { %1622 = vmatmul.mubr.msk.bf16.vlgmr.msra.gmra.mxu1 %vm704_vm1, %v542_v56 }
 0x12a   : > { %1626 = vmatpush3.bf16.msra.mxu1 %v2089_v57  ;;  %1627 = vmatprep.mubr.msk.bf16.mxu1 %vm1915_vm0, %v1913_v0 }
 0x12b   : > { %1631 = vmatprep.subr.bf16.mxu1 %v1913_v0 }
 0x1e9   : > { %v745_v59 = vpop.f32.mrf.mxu1 }
 0x1ea   : > { %v752_v61 = vmul.f32 0.17677669, %v745_v59 }
 0x1eb   : > { %v1623_v62 = vpop.f32.mrf.mxu1 }
 0x1ec   : > { %v754_v63 = vsel %vm702_vm2, %v752_v61, -1e+09 }
 0x1ed   : > { %v748_v1 = vpop.f32.mrf.mxu1  ;;  %v757_v2 = vsel %vm756_vm3, %v754_v63, -inf }
 0x1ee   : > { %v753_v3 = vmul.f32 0.17677669, %v748_v1  ;;  %758 = vmax.xlane.f32.xlu0 %v757_v2 }
 0x1ef   : > { %v1624_v4 = vpop.f32.mrf.mxu1 }
 0x1f0   : > { %v755_v5 = vsel %vm703_vm4, %v753_v3, -1e+09 }
 0x1f1   : > { %v760_v6 = vsel %vm756_vm3, %v755_v5, -inf }
 0x1f2   : > { %761 = vmax.xlane.f32.xlu0 %v760_v6 }
 0x208   : > { %830 = vrot.lane.b32.xlu0 %v695_v46, %s1916_s28 }
 0x20c   : > { %1103 = vrot.lane.b32.xlu0 %v695_v46, %s1917_s29 }
 0x277   : > { %v759_v7 = vpop.xlane.xlu0 %758 }
 0x278   : > { %v763_v8 = vsub.f32 %v754_v63, %v759_v7 }
 0x27a   : > { %v765_v9 = vmul.f32 1.442695, %v763_v8 }
 0x27b   : > { %v762_v10 = vpop.xlane.xlu0 %761 }
 0x27c   : > { %1776 = vpow2.f32 %v765_v9  ;;  %v764_v11 = vsub.f32 %v755_v5, %v762_v10 }
 0x27e   : > { %v767_v12 = vmul.f32 1.442695, %v764_v11 }
 0x27f   : > { %v831_v20 = vpop.permute.xlu0 %830 }
 0x280   : > { %1778 = vpow2.f32 %v767_v12  ;;  %v836_v34 = vsel %vm704_vm1, %v831_v20, 0 }
 0x283   : > { %v1104_v25 = vpop.permute.xlu0 %1103 }
 0x284   : > { %v1109_v31 = vsel %vm704_vm1, %v1104_v25, 0 }
 0x289   : > { %v1777_v13 = vpop.eup %1776 }
 0x28a   : > { %v769_v14 = vsel %vm756_vm3, %v1777_v13, 0.0 }
 0x28b   : > { %770 = vadd.xlane.f32.xlu1 %v769_v14 }
 0x28d   : > { %v1779_v15 = vpop.eup %1778 }
 0x28e   : > { %v772_v16 = vsel %vm756_vm3, %v1779_v15, 0.0 }
 0x28f   : > { %773 = vadd.xlane.f32.xlu1 %v772_v16 }
 0x2a0   : > { %827 = vrot.lane.b32.xlu1 %v542_v56, %s1916_s28 }
 0x2a4   : > { %967 = vrot.lane.b32.xlu1 %v695_v46, %s1918_s30 }
 0x2a8   : > { %965 = vrot.lane.b32.xlu1 %v542_v56, %s1918_s30 }
 0x2ac   : > { %1101 = vrot.lane.b32.xlu1 %v542_v56, %s1917_s29 }
 0x314   : > { %v771_v17 = vpop.xlane.xlu1 %770 }
 0x315   : > { %1780 = vrcp.f32 %v771_v17 }
 0x318   : > { %v774_v18 = vpop.xlane.xlu1 %773 }
 0x319   : > { %1782 = vrcp.f32 %v774_v18 }
 0x31c   : > { %v828_v19 = vpop.permute.xlu1 %827 }
 0x320   : > { %v968_v21 = vpop.permute.xlu1 %967 }
 0x321   : > { %v973_v22 = vsel %vm704_vm1, %v968_v21, 0 }
 0x322   : > { %1644 = vmatpush3.bf16.xpose.msra.mxu0 %v973_v22  ;;  %v1781_v23 = vpop.eup %1780 }
 0x323   : > { %1655 = vmatprep.subr.bf16.mxu0 %v1913_v0  ;;  %v777_v26 = vmul.f32 %v1781_v23, %v1777_v13 }
 0x324   : > { %v966_v30 = vpop.permute.xlu1 %965 }
 0x326   : > { %v1783_v24 = vpop.eup %1782 }
 0x327   : > { %v778_v27 = vmul.f32 %v1783_v24, %v1779_v15 }
 0x328   : > { %v1102_v35 = vpop.permute.xlu1 %1101 }
 0x329   : > { %1646 = vmatmul.mubr.msk.bf16.vlgmr.msra.gmra.mxu0 %vm704_vm1, %v966_v30  ;;  %v779_v32 = vpack.c.bf16 %v778_v27, %v777_v26 }
 0x32a   : > { %1656 = vmatpush3.bf16.xpose.msra.mxu0 %v1109_v31  ;;  %1657 = vmatprep.mubr.msk.bf16.mxu0 %vm1915_vm0, %v1913_v0 }
 0x32b   : > { %1628 = vmatmul.mubr.msk.bf16.vlgmr.msra.gmra.mxu1 %vm756_vm3, %v779_v32  ;;  %1667 = vmatprep.subr.bf16.mxu0 %v1913_v0 }
 0x32c   : > { %1632 = vmatpush3.bf16.xpose.msra.mxu1 %v836_v34  ;;  %1633 = vmatprep.mubr.msk.bf16.mxu1 %vm1915_vm0, %v1913_v0 }
 0x32d   : > { %1637 = vmatprep.subr.bf16.mxu1 %v1913_v0 }
 0x331   : > { %1658 = vmatmul.mubr.msk.bf16.vlgmr.msra.gmra.mxu0 %vm704_vm1, %v1102_v35 }
 0x332   : > { %1683 = vmatprep.mubr.msk.bf16.mxu0 %vm1915_vm0, %v1913_v0 }
 0x333   : > { %1634 = vmatmul.mubr.msk.bf16.vlgmr.msra.gmra.mxu1 %vm704_vm1, %v828_v19 }
 0x334   : > { %1639 = vmatprep.mubr.msk.bf16.mxu1 %vm1915_vm0, %v1913_v0 }
 0x3e9   : > { %v1009_v36 = vpop.f32.mrf.mxu0 }
 0x3ea   : > { %v1016_v45 = vmul.f32 0.17677669, %v1009_v36 }
 0x3eb   : > { %v817_v37 = vpop.f32.mrf.mxu1  ;;  %v1647_v38 = vpop.f32.mrf.mxu0 }
 0x3ec   : > { %824 = vst.msk [vmem:[#allocation2] sm:$0xff] %vm704_vm1, %v817_v37  ;;  %v1018_v55 = vsel %vm702_vm2, %v1016_v45, -1e+09 }
 0x3ed   : > { %v1629_v39 = vpop.f32.mrf.mxu1  ;;  %v1012_v40 = vpop.f32.mrf.mxu0  ;;  %v1020_v2 = vsel %vm756_vm3, %v1018_v55, -inf }
 0x3ee   : > { %v1017_v56 = vmul.f32 0.17677669, %v1012_v40 }
 0x3ef   : > { %v820_v41 = vpop.f32.mrf.mxu1  ;;  %v1648_v42 = vpop.f32.mrf.mxu0 }
 0x3f0   : > { %825 = vst.msk [vmem:[#allocation2 + $0x8] sm:$0xff] %vm704_vm1, %v820_v41  ;;  %v1019_v4 = vsel %vm703_vm4, %v1017_v56, -1e+09 }
 0x3f1   : > { %v1630_v43 = vpop.f32.mrf.mxu1  ;;  %v1145_v44 = vpop.f32.mrf.mxu0  ;;  %v1023_v6 = vsel %vm756_vm3, %v1019_v4, -inf }
 0x3f2   : > { %v1152_v3 = vmul.f32 0.17677669, %v1145_v44 }
 0x3f3   : > { %v872_v46 = vpop.f32.mrf.mxu1  ;;  %v1659_v47 = vpop.f32.mrf.mxu0 }
 0x3f4   : > { %v879_v48 = vmul.f32 0.17677669, %v872_v46  ;;  %v1154_v8 = vsel %vm702_vm2, %v1152_v3, -1e+09  ;;  %v1768_v3 = vld [vmem:[#allocation7 + $0x38] sm:$0xff]  }
 0x3f5   : > { %v1635_v49 = vpop.f32.mrf.mxu1  ;;  %v1148_v50 = vpop.f32.mrf.mxu0  ;;  %v1156_v9 = vsel %vm756_vm3, %v1154_v8, -inf  ;;  %1668 = vmatpush3.bf16.msra.mxu0 %v1768_v3 }
 0x3f6   : > { %v881_v51 = vsel %vm702_vm2, %v879_v48, -1e+09  ;;  %v1153_v59 = vmul.f32 0.17677669, %v1148_v50  ;;  %1669 = vmatprep.subr.bf16.mxu0 %v1913_v0 }
 0x3f7   : > { %v875_v52 = vpop.f32.mrf.mxu1  ;;  %v1660_v53 = vpop.f32.mrf.mxu0  ;;  %v883_v54 = vsel %vm756_vm3, %v881_v51, -inf }
 0x3f8   : > { %v880_v61 = vmul.f32 0.17677669, %v875_v52  ;;  %884 = vmax.xlane.f32.xlu0 %v883_v54  ;;  %v1155_v5 = vsel %vm703_vm4, %v1153_v59, -1e+09 }
 0x3f9   : > { %v1636_v62 = vpop.f32.mrf.mxu1  ;;  %v1159_v7 = vsel %vm756_vm3, %v1155_v5, -inf }
 0x3fa   : > { %v882_v63 = vsel %vm703_vm4, %v880_v61, -1e+09 }
 0x3fb   : > { %v886_v1 = vsel %vm756_vm3, %v882_v63, -inf }
 0x3fc   : > { %887 = vmax.xlane.f32.xlu1 %v886_v1  ;;  %1021 = vmax.xlane.f32.xlu0 %v1020_v2 }
 0x400   : > { %1024 = vmax.xlane.f32.xlu0 %v1023_v6  ;;  %1160 = vmax.xlane.f32.xlu1 %v1159_v7  ;;  %v1771_v6 = vld [vmem:[#allocation7 + $0x20] sm:$0xff]  }
 0x404   : > { %1157 = vmax.xlane.f32.xlu0 %v1156_v9 }
 0x481   : > { %v885_v10 = vpop.xlane.xlu0 %884 }
 0x482   : > { %v889_v18 = vsub.f32 %v881_v51, %v885_v10 }
 0x484   : > { %v891_v58 = vmul.f32 1.442695, %v889_v18 }
 0x485   : > { %v888_v11 = vpop.xlane.xlu1 %887  ;;  %v1022_v12 = vpop.xlane.xlu0 %1021 }
 0x486   : > { %v1026_v13 = vsub.f32 %v1018_v55, %v1022_v12  ;;  %v890_v19 = vsub.f32 %v882_v63, %v888_v11  ;;  %v1773_v11 = vld [vmem:[#allocation7 + $0x10] sm:$0xff]  }
 0x488   : > { %v1028_v14 = vmul.f32 1.442695, %v1026_v13  ;;  %v893_v23 = vmul.f32 1.442695, %v890_v19 }
 0x489   : > { %v1025_v60 = vpop.xlane.xlu0 %1024  ;;  %v1161_v15 = vpop.xlane.xlu1 %1160 }
 0x48a   : > { %v1027_v16 = vsub.f32 %v1019_v4, %v1025_v60  ;;  %v1163_v17 = vsub.f32 %v1155_v5, %v1161_v15  ;;  %1784 = vpow2.f32 %v1028_v14  ;;  %v1769_v4 = vld [vmem:[#allocation7 + $0x30] sm:$0xff]   ;;  %v1770_v5 = vld [vmem:[#allocation7 + $0x28] sm:$0xff]   ;;  %v1775_v15 = vld [vmem:[#allocation7] sm:$0xff]  }
 0x48b   : > { %1670 = vmatpush3.bf16.msra.mxu0 %v1769_v4  ;;  %v1774_v14 = vld [vmem:[#allocation7 + $0x8] sm:$0xff]  }
 0x48c   : > { %v1030_v20 = vmul.f32 1.442695, %v1027_v16  ;;  %v1166_v21 = vmul.f32 1.442695, %v1163_v17  ;;  %1671 = vmatprep.subr.bf16.mxu0 %v1913_v0 }
 0x48d   : > { %v1158_v22 = vpop.xlane.xlu0 %1157 }
 0x48e   : > { %1786 = vpow2.f32 %v1030_v20  ;;  %v1162_v33 = vsub.f32 %v1154_v8, %v1158_v22  ;;  %v1772_v8 = vld [vmem:[#allocation7 + $0x18] sm:$0xff]  }
 0x48f   : > { %1788 = vpow2.f32 %v1166_v21  ;;  %1672 = vmatpush3.bf16.msra.mxu0 %v1770_v5 }
 0x490   : > { %v1164_v24 = vmul.f32 1.442695, %v1162_v33  ;;  %1673 = vmatprep.subr.bf16.mxu0 %v1913_v0 }
 0x492   : > { %1790 = vpow2.f32 %v1164_v24 }
 0x493   : > { %1792 = vpow2.f32 %v891_v58  ;;  %1674 = vmatpush3.bf16.msra.mxu0 %v1771_v6 }
 0x494   : > { %1794 = vpow2.f32 %v893_v23  ;;  %1675 = vmatprep.subr.bf16.mxu0 %v1913_v0 }
 0x497   : > { %v1785_v25 = vpop.eup %1784  ;;  %1676 = vmatpush3.bf16.msra.mxu0 %v1772_v8 }
 0x498   : > { %v1032_v26 = vsel %vm756_vm3, %v1785_v25, 0.0  ;;  %1677 = vmatprep.subr.bf16.mxu0 %v1913_v0 }
 0x499   : > { %1033 = vadd.xlane.f32.xlu0 %v1032_v26 }
 0x49b   : > { %v1787_v27 = vpop.eup %1786  ;;  %1678 = vmatpush3.bf16.msra.mxu0 %v1773_v11 }
 0x49c   : > { %v1035_v30 = vsel %vm756_vm3, %v1787_v27, 0.0  ;;  %v1789_v31 = vpop.eup %1788  ;;  %1679 = vmatprep.subr.bf16.mxu0 %v1913_v0 }
 0x49d   : > { %1036 = vadd.xlane.f32.xlu1 %v1035_v30  ;;  %v1171_v36 = vsel %vm756_vm3, %v1789_v31, 0.0  ;;  %v1549_v30 = vld [vmem:[%s2224_s7] ss:$0 sm:$0xff] }
 0x49f   : > { %v1791_v32 = vpop.eup %1790  ;;  %1680 = vmatpush3.bf16.msra.mxu0 %v1774_v14 }
 0x4a0   : > { %v1793_v34 = vpop.eup %1792  ;;  %v1168_v35 = vsel %vm756_vm3, %v1791_v32, 0.0  ;;  %1681 = vmatprep.subr.bf16.mxu0 %v1913_v0 }
 0x4a1   : > { %v1795_v37 = vpop.eup %1794  ;;  %1169 = vadd.xlane.f32.xlu0 %v1168_v35  ;;  %1172 = vadd.xlane.f32.xlu1 %v1171_v36  ;;  %v895_v38 = vsel %vm756_vm3, %v1793_v34, 0.0 }
 0x4a2   : > { %v898_v39 = vsel %vm756_vm3, %v1795_v37, 0.0 }
 0x4a3   : > { %1682 = vmatpush3.bf16.msra.mxu0 %v1775_v15 }
 0x4a5   : > { %896 = vadd.xlane.f32.xlu0 %v895_v38  ;;  %899 = vadd.xlane.f32.xlu1 %v898_v39 }
 0x4b6   : > { %1043 = vrot.lane.b32.xlu1 %v2089_v57, %s1918_s30 }
 0x4ba   : > { %1179 = vrot.lane.b32.xlu1 %v2089_v57, %s1917_s29 }
 0x4bb   : > { %907 = vrot.lane.b32.xlu0 %v2089_v57, %s1916_s28 }
 0x522   : > { %v1034_v40 = vpop.xlane.xlu0 %1033 }
 0x526   : > { %v1037_v41 = vpop.xlane.xlu1 %1036 }
 0x52a   : > { %v1170_v42 = vpop.xlane.xlu0 %1169  ;;  %v1173_v43 = vpop.xlane.xlu1 %1172 }
 0x52e   : > { %v897_v44 = vpop.xlane.xlu0 %896  ;;  %v900_v45 = vpop.xlane.xlu1 %899 }
 0x52f   : > { %1796 = vrcp.f32 %v897_v44 }
 0x530   : > { %1798 = vrcp.f32 %v900_v45 }
 0x531   : > { %1800 = vrcp.f32 %v1037_v41 }
 0x532   : > { %v908_v46 = vpop.permute.xlu0 %907  ;;  %1802 = vrcp.f32 %v1034_v40  ;;  %v1044_v52 = vpop.permute.xlu1 %1043 }
 0x533   : > { %1638 = vmatpush3.bf16.msra.mxu1 %v908_v46  ;;  %1804 = vrcp.f32 %v1170_v42 }
 0x534   : > { %1649 = vmatprep.subr.bf16.mxu1 %v1913_v0  ;;  %1806 = vrcp.f32 %v1173_v43 }
 0x536   : > { %v1180_v62 = vpop.permute.xlu1 %1179 }
 0x53c   : > { %v1797_v47 = vpop.eup %1796 }
 0x53d   : > { %v1799_v48 = vpop.eup %1798  ;;  %v903_v49 = vmul.f32 %v1797_v47, %v1793_v34 }
 0x53e   : > { %v904_v57 = vmul.f32 %v1799_v48, %v1795_v37  ;;  %v1801_v51 = vpop.eup %1800 }
 0x53f   : > { %v1803_v53 = vpop.eup %1802  ;;  %v1041_v54 = vmul.f32 %v1801_v51, %v1787_v27 }
 0x540   : > { %v905_v50 = vpack.c.bf16 %v904_v57, %v903_v49  ;;  %v1040_v55 = vmul.f32 %v1803_v53, %v1785_v25  ;;  %v1805_v56 = vpop.eup %1804 }
 0x541   : > { %v1807_v61 = vpop.eup %1806  ;;  %v1176_v63 = vmul.f32 %v1805_v56, %v1791_v32 }
 0x542   : > { %1640 = vmatmul.mubr.msk.bf16.vlgmr.msra.gmra.mxu1 %vm756_vm3, %v905_v50  ;;  %v1042_v59 = vpack.c.bf16 %v1041_v54, %v1040_v55  ;;  %v1177_v1 = vmul.f32 %v1807_v61, %v1789_v31  ;;  %v1558_v55 = vld [vmem:[%s2225_s8] ss:$0 sm:$0xff] }
 0x543   : > { %1650 = vmatpush3.bf16.msra.mxu1 %v1044_v52  ;;  %1651 = vmatprep.mubr.msk.bf16.mxu1 %vm1915_vm0, %v1913_v0 }
 0x544   : > { %1661 = vmatprep.subr.bf16.mxu1 %v1913_v0  ;;  %v1178_v2 = vpack.c.bf16 %v1177_v1, %v1176_v63 }
 0x54a   : > { %1652 = vmatmul.mubr.msk.bf16.vlgmr.msra.gmra.mxu1 %vm756_vm3, %v1042_v59  ;;  %v1559_v59 = vld [vmem:[%s2226_s9] ss:$0 sm:$0xff] }
 0x54b   : > { %1662 = vmatpush3.bf16.msra.mxu1 %v1180_v62  ;;  %1663 = vmatprep.mubr.msk.bf16.mxu1 %vm1915_vm0, %v1913_v0 }
 0x552   : > { %1664 = vmatmul.mubr.msk.bf16.vlgmr.msra.gmra.mxu1 %vm756_vm3, %v1178_v2 }
 0x602   : > { %v947_v7 = vpop.f32.mrf.mxu1 }
 0x603   : > { %956 = vrot.lane.b32.xlu1 %v947_v7, %s1917_s29 }
 0x604   : > { %v1641_v9 = vpop.f32.mrf.mxu1 }
 0x606   : > { %v950_v10 = vpop.f32.mrf.mxu1 }
 0x607   : > { %958 = vrot.lane.b32.xlu0 %v950_v10, %s1917_s29 }
 0x608   : > { %v1642_v12 = vpop.f32.mrf.mxu1 }
 0x60a   : > { %v1083_v13 = vpop.f32.mrf.mxu1 }
 0x60b   : > { %1092 = vrot.lane.b32.xlu1 %v1083_v13, %s1918_s30 }
 0x60c   : > { %v1653_v60 = vpop.f32.mrf.mxu1 }
 0x60e   : > { %v1086_v16 = vpop.f32.mrf.mxu1 }
 0x60f   : > { %1094 = vrot.lane.b32.xlu0 %v1086_v16, %s1918_s30 }
 0x610   : > { %v1654_v17 = vpop.f32.mrf.mxu1 }
 0x612   : > { %v1219_v18 = vpop.f32.mrf.mxu1 }
 0x613   : > { %1228 = vrot.lane.b32.xlu1 %v1219_v18, %s1916_s28 }
 0x614   : > { %v1665_v19 = vpop.f32.mrf.mxu1 }
 0x616   : > { %v1222_v20 = vpop.f32.mrf.mxu1 }
 0x617   : > { %1230 = vrot.lane.b32.xlu0 %v1222_v20, %s1916_s28 }
 0x618   : > { %v1666_v21 = vpop.f32.mrf.mxu1 }
 0x675   : > { %v957_v22 = vpop.permute.xlu1 %956 }
 0x676   : > { %963 = vst.msk [vmem:[#allocation2] sm:$0xff] %vm962_vm5, %v957_v22 }
 0x679   : > { %v959_v33 = vpop.permute.xlu0 %958 }
 0x67a   : > { %964 = vst.msk [vmem:[#allocation2 + $0x8] sm:$0xff] %vm962_vm5, %v959_v33 }
 0x67d   : > { %v1093_v0 = vpop.permute.xlu1 %1092 }
 0x67e   : > { %1099 = vst.msk [vmem:[#allocation2] sm:$0xff] %vm1098_vm6, %v1093_v0 }
 0x681   : > { %v1095_v58 = vpop.permute.xlu0 %1094 }
 0x682   : > { %1100 = vst.msk [vmem:[#allocation2 + $0x8] sm:$0xff] %vm1098_vm6, %v1095_v58 }
 0x685   : > { %v1229_v23 = vpop.permute.xlu1 %1228 }
 0x686   : > { %1235 = vst.msk [vmem:[#allocation2] sm:$0xff] %vm1234_vm7, %v1229_v23 }
 0x689   : > { %v1231_v24 = vpop.permute.xlu0 %1230 }
 0x68a   : > { %1236 = vst.msk [vmem:[#allocation2 + $0x8] sm:$0xff] %vm1234_vm7, %v1231_v24 }
 0x68d   : > { %v1237_v25 = vld [vmem:[#allocation2] sm:$0xff] }
 0x691   : > { %v1238_v26 = vld [vmem:[#allocation2 + $0x8] sm:$0xff] }
 0x692   : > { %v1239_v27 = vpack.c.bf16 %v1238_v26, %v1237_v25 }
 0x694   : > { %1684 = vmatmul.mubr.bf16.vlgmr.msra.gmra.mxu0 %v1239_v27 }
 0x754   : > { %v1345_v31 = vpop.f32.mrf.mxu0 }
 0x755   : > { %v1346_v32 = vadd.f32 %v1549_v30, %v1345_v31 }
 0x756   : > { %v1685_v34 = vpop.f32.mrf.mxu0 }
 0x757   : > { %v1352_v35 = vadd.f32 %v1346_v32, %v2064_v28 }
 0x758   : > { %v1348_v36 = vpop.f32.mrf.mxu0 }
 0x759   : > { %v1349_v37 = vadd.f32 %v1549_v30, %v1348_v36  ;;  %1354 = vadd.xlane.f32.xlu1 %v1352_v35  ;;  %v1361_v38 = vmul.f32 %v1352_v35, %v1352_v35 }
 0x75a   : > { %v1686_v39 = vpop.f32.mrf.mxu0 }
 0x75b   : > { %1363 = vadd.xlane.f32.xlu0 %v1361_v38  ;;  %v1353_v40 = vadd.f32 %v1349_v37, %v2066_v29 }
 0x75d   : > { %v1362_v41 = vmul.f32 %v1353_v40, %v1353_v40 }
 0x75f   : > { %1356 = vadd.xlane.f32.xlu0 %v1353_v40 }
 0x763   : > { %1365 = vadd.xlane.f32.xlu0 %v1362_v41 }
 0x7e2   : > { %v1355_v42 = vpop.xlane.xlu1 %1354 }
 0x7e3   : > { %v1359_v43 = vmul.f32 0.0078125, %v1355_v42 }
 0x7e4   : > { %v1364_v44 = vpop.xlane.xlu0 %1363 }
 0x7e5   : > { %v1369_v45 = vmul.f32 %v1359_v43, %v1359_v43  ;;  %v1367_v46 = vmul.f32 0.0078125, %v1364_v44  ;;  %v1373_v29 = vsub.f32 %v1352_v35, %v1359_v43 }
 0x7e7   : > { %v1371_v47 = vsub.f32 %v1367_v46, %v1369_v45 }
 0x7e8   : > { %v1357_v48 = vpop.xlane.xlu0 %1356 }
 0x7e9   : > { %v1375_v28 = vadd.f32 1e-06, %v1371_v47  ;;  %v1360_v49 = vmul.f32 0.0078125, %v1357_v48 }
 0x7eb   : > { %1808 = vrsqrt.f32 %v1375_v28  ;;  %v1370_v50 = vmul.f32 %v1360_v49, %v1360_v49  ;;  %v1374_v63 = vsub.f32 %v1353_v40, %v1360_v49 }
 0x7ec   : > { %v1366_v57 = vpop.xlane.xlu0 %1365 }
 0x7ed   : > { %v1368_v51 = vmul.f32 0.0078125, %v1366_v57 }
 0x7ef   : > { %v1372_v52 = vsub.f32 %v1368_v51, %v1370_v50 }
 0x7f1   : > { %v1376_v53 = vadd.f32 1e-06, %v1372_v52 }
 0x7f3   : > { %1810 = vrsqrt.f32 %v1376_v53 }
 0x7f8   : > { %v1809_v54 = vpop.eup %1808 }
 0x7f9   : > { %v1379_v56 = vmul.f32 %v1809_v54, %v1373_v29 }
 0x7fb   : > { %v1388_v61 = vmul.f32 %v1558_v55, %v1379_v56 }
 0x7fd   : > { %v1397_v62 = vadd.f32 %v1559_v59, %v1388_v61 }
 0x7ff   : > { %1399 = vst [vmem:[%s423_s16] sm:$0xff] %v1397_v62 }
 0x800   : > { %v1811_v1 = vpop.eup %1810 }
 0x801   : > { %v1380_v2 = vmul.f32 %v1811_v1, %v1374_v63 }
 0x803   : > { %v1389_v3 = vmul.f32 %v1558_v55, %v1380_v2 }
 0x805   : > { %v1398_v4 = vadd.f32 %v1559_v59, %v1389_v3 }
 0x807   : > { %1400 = vst [vmem:[%s423_s16 + $0x8] sm:$0xff] %v1398_v4 }
 0x808 PF: > { %s22_s13 = sadd.s32 1, %s1904_s13  }
 0x809   : > { %p19_p3 = scmp.ge.s32.totalorder %s22_s13, 4  }
 0x80b   :  { %21 = sbr.rel (!%p19_p3) target bundleno = 2 (0x2), region = 106 }
 0x810   :  { %1422 = vsyncpa [#allocation4], 1 }
 0x811   :  { %1424 = vsyncpa [#allocation4 + $0x1], 1 }
 0x812   :  { %1425 = vsyncpa [#allocation6], 1 }

// kernel: decoder_layer_forward.4
= control target key start
LH: loop header
LB: loop body
LE: loop exit
PB: predicated region body
PF: predicated region fallthrough
CT: control target
= control target key end

     0   :  { %s1750_s13 = smov 0   ;;  %s1993_s0 = inlined_call_operand.vmem [shape: f32[2,16,128], index: 0, kind: input, shape index: {}]   ;;  %s1994_s1 = inlined_call_operand.vmem [shape: f32[2,16,128], index: 1, kind: input, shape index: {}]   ;;  %s1995_s2 = inlined_call_operand.vmem [shape: bf16[128,128], index: 2, kind: input, shape index: {}]   ;;  %s1996_s3 = inlined_call_operand.vmem [shape: f32[1,128], index: 3, kind: input, shape index: {}]   ;;  %s1997_s4 = inlined_call_operand.vmem [shape: bf16[128,256], index: 4, kind: input, shape index: {}]   ;;  %s1998_s5 = inlined_call_operand.vmem [shape: f32[1,256], index: 5, kind: input, shape index: {}]   ;;  %s1999_s6 = inlined_call_operand.vmem [shape: bf16[128,128], index: 6, kind: input, shape index: {}]   ;;  %s2000_s7 = inlined_call_operand.vmem [shape: f32[1,128], index: 7, kind: input, shape index: {}]   ;;  %s2001_s8 = inlined_call_operand.vmem [shape: f32[1,128], index: 8, kind: input, shape index: {}]   ;;  %s2002_s9 = inlined_call_operand.vmem [shape: f32[1,128], index: 9, kind: input, shape index: {}]   ;;  %s2003_s10 = inlined_call_operand.vmem [shape: f32[2,16,128], index: 10, kind: output, shape index: {}]  }
   0x1 LB: > { %s1409_s14 = sadd.s32 4294967295, %s1687_s13   ;;  %p1413_p0 = scmp.ge.s32.totalorder %s1687_s13, 1  ;;  %s1687_s13 = sphi %s1750_s13, %s20_s13  }
   0x2   : > { %p322_p1 = scmp.lt.s32.totalorder %s1687_s13, 3 }
   0x4   : > { %p323_p2 = pnand %p1413_p0, %p322_p1 }
   0x5   : > { %p365_p3 = scmp.lt.s32.totalorder (!%p323_p2), %s1409_s14, 1  ;;  %s1692_s20 = smov (!%p323_p2), 96  }
   0x6   : > { %326 = sbr.rel (%p323_p2) target bundleno = 2011 (0x7db), region = 60  ;;  %s1693_s21 = smov (!%p323_p2), 32  }
   0xb   : > { %v1605_v0 = vld [vmem:[%s1997_s4 + $0x74] ss:$8 sps:$4 sm:$0xff]   ;;  %v1607_v1 = vld [vmem:[%s1997_s4 + $0x70] ss:$8 sps:$4 sm:$0xff]   ;;  %v1689_v2 = vmov 0.0   ;;  %v1690_v3 = vmov 0   ;;  %v518_v32 = vlaneseq }
   0xc   : > { %1503 = vmatprep.subr.bf16.mxu0 %v1689_v2  ;;  %640 = vmatprep.mubr.bf16.mxu1 %v1690_v3  ;;  %v1608_v4 = vld [vmem:[%s1995_s2 + $0x38] sm:$0xff]   ;;  %v1609_v5 = vld [vmem:[%s1997_s4 + $0x64] ss:$8 sps:$4 sm:$0xff]   ;;  %v1611_v6 = vld [vmem:[%s1997_s4 + $0x60] ss:$8 sps:$4 sm:$0xff]   ;;  %vm1691_vm0 = vmmov 0  }
   0xd   : > { %608 = vmatprep.subr.bf16.mxu1 %v1605_v0  ;;  %1519 = vmatprep.mubr.msk.bf16.mxu0 %vm1691_vm0, %v1689_v2  ;;  %v1612_v7 = vld [vmem:[%s1995_s2 + $0x30] sm:$0xff]   ;;  %v1616_v10 = vld [vmem:[%s1995_s2 + $0x28] sm:$0xff]   ;;  %v1620_v13 = vld [vmem:[%s1995_s2 + $0x20] sm:$0xff]   ;;  %s2005_s14 = smov (!%p365_p3, %s1409_s14), 1  ;;  %v519_v33 = vshrl.u32 %v518_v32, 7  ;;  %vm653_vm1 = vcmask 261120  }
   0xe   : > { %609 = vmatpush1.bf16.msra.mxu1 %v1607_v1  ;;  %1504 = vmatpush3.bf16.msra.mxu0 %v1608_v4  ;;  %v1613_v8 = vld [vmem:[%s1997_s4 + $0x54] ss:$8 sps:$4 sm:$0xff]   ;;  %v1615_v9 = vld [vmem:[%s1997_s4 + $0x50] ss:$8 sps:$4 sm:$0xff]   ;;  %v1617_v11 = vld [vmem:[%s1997_s4 + $0x44] ss:$8 sps:$4 sm:$0xff]  }
   0xf   : > { %610 = vmatprep.subr.bf16.mxu1 %v1609_v5  ;;  %1505 = vmatprep.subr.bf16.mxu0 %v1689_v2  ;;  %v1619_v12 = vld [vmem:[%s1997_s4 + $0x40] ss:$8 sps:$4 sm:$0xff]   ;;  %v1621_v14 = vld [vmem:[%s1997_s4 + $0x34] ss:$8 sps:$4 sm:$0xff]   ;;  %v1623_v15 = vld [vmem:[%s1997_s4 + $0x30] ss:$8 sps:$4 sm:$0xff]  }
  0x10   : > { %v1624_v16 = vld [vmem:[%s1995_s2 + $0x18] sm:$0xff]   ;;  %v1625_v17 = vld [vmem:[%s1997_s4 + $0x24] ss:$8 sps:$4 sm:$0xff]   ;;  %v1627_v18 = vld [vmem:[%s1997_s4 + $0x20] ss:$8 sps:$4 sm:$0xff]   ;;  %s1823_s15 = sshll.u32 %s2005_s14, 4 }
  0x11   : > { %v1628_v19 = vld [vmem:[%s1995_s2 + $0x10] sm:$0xff]   ;;  %v1632_v22 = vld [vmem:[%s1995_s2 + $0x8] sm:$0xff]   ;;  %s374_s25 = scalar_lea.vmem %s1994_s1, %s1823_s15  ;;  %s369_s28 = scalar_lea.vmem %s1993_s0, %s1823_s15  ;;  %v1636_v27 = vld [vmem:[%s1995_s2] sm:$0xff]   ;;  %v520_v34 = vsub.s32 0, %v519_v33  ;;  %v524_v45 = vsub.s32 1, %v519_v33  ;;  %vm703_vm2 = vcmask 130048  }
  0x12   : > { %611 = vmatpush1.bf16.msra.mxu1 %v1611_v6  ;;  %1506 = vmatpush3.bf16.msra.mxu0 %v1612_v7  ;;  %v1629_v20 = vld [vmem:[%s1997_s4 + $0x14] ss:$8 sps:$4 sm:$0xff]   ;;  %v1631_v21 = vld [vmem:[%s1997_s4 + $0x10] ss:$8 sps:$4 sm:$0xff]   ;;  %v1633_v23 = vld [vmem:[%s1997_s4 + $0x4] ss:$8 sps:$4 sm:$0xff]  }
  0x13   : > { %612 = vmatprep.subr.bf16.mxu1 %v1613_v8  ;;  %1507 = vmatprep.subr.bf16.mxu0 %v1689_v2  ;;  %v1635_v24 = vld [vmem:[%s1997_s4] ss:$8 sps:$4 sm:$0xff]   ;;  %s1694_s14 = smov 64   ;;  %vm907_vm3 = vcmask 523520   ;;  %vm1041_vm4 = vcmask 785920   ;;  %vm1175_vm5 = vcmask 1048320  }
  0x14   : > { %v383_v25 = vld [vmem:[%s374_s25] sm:$0xff]  ;;  %v384_v26 = vld [vmem:[%s374_s25 + $0x8] sm:$0xff] }
  0x15   : > { %v1853_v28 = vld [vmem:[%s369_s28] sm:$0xff]  ;;  %v1855_v29 = vld [vmem:[%s369_s28 + $0x8] sm:$0xff]  ;;  %v499_v30 = vpack.c.bf16 %v384_v26, %v383_v25  ;;  %s379_s28 = scalar_lea.vmem %s2003_s10, %s1823_s15 }
  0x16   : > { %613 = vmatpush1.bf16.msra.mxu1 %v1615_v9  ;;  %1508 = vmatpush3.bf16.msra.mxu0 %v1616_v10  ;;  %v385_v31 = vpack.c.bf16 %v1855_v29, %v1853_v28  ;;  %v516_v35 = vld [vmem:[%s1998_s5] sm:$0x3] }
  0x17   : > { %614 = vmatprep.subr.bf16.mxu1 %v1617_v11  ;;  %1509 = vmatprep.subr.bf16.mxu0 %v1689_v2  ;;  %v521_v37 = vrot.slane %v516_v35, %v520_v34  ;;  %v1420_v48 = vld [vmem:[%s1996_s3] ss:$0 sm:$0xff]  ;;  %v525_v51 = vrot.slane %v516_v35, %v524_v45 }
  0x1a   : > { %615 = vmatpush1.bf16.msra.mxu1 %v1619_v12  ;;  %1510 = vmatpush3.bf16.msra.mxu0 %v1620_v13 }
  0x1b   : > { %616 = vmatprep.subr.bf16.mxu1 %v1621_v14  ;;  %1511 = vmatprep.subr.bf16.mxu0 %v1689_v2 }
  0x1e   : > { %617 = vmatpush1.bf16.msra.mxu1 %v1623_v15  ;;  %1512 = vmatpush3.bf16.msra.mxu0 %v1624_v16 }
  0x1f   : > { %618 = vmatprep.subr.bf16.mxu1 %v1625_v17  ;;  %1513 = vmatprep.subr.bf16.mxu0 %v1689_v2 }
  0x22   : > { %619 = vmatpush1.bf16.msra.mxu1 %v1627_v18  ;;  %1514 = vmatpush3.bf16.msra.mxu0 %v1628_v19 }
  0x23   : > { %620 = vmatprep.subr.bf16.mxu1 %v1629_v20  ;;  %1515 = vmatprep.subr.bf16.mxu0 %v1689_v2 }
  0x26   : > { %621 = vmatpush1.bf16.msra.mxu1 %v1631_v21  ;;  %1516 = vmatpush3.bf16.msra.mxu0 %v1632_v22 }
  0x27   : > { %622 = vmatprep.subr.bf16.mxu1 %v1633_v23  ;;  %1517 = vmatprep.subr.bf16.mxu0 %v1689_v2 }
  0x2a   : > { %623 = vmatpush1.bf16.msra.mxu1 %v1635_v24  ;;  %1518 = vmatpush3.bf16.msra.mxu0 %v1636_v27 }
  0x2b   : > { %1523 = vmatprep.subr.bf16.mxu1 %v1689_v2  ;;  %1547 = vmatprep.subr.bf16.mxu0 %v1689_v2 }
  0x2d   : > { %641 = vmatmul.mubr.bf16.vlgmr.msra.gmra.mxu1 %v499_v30  ;;  %1520 = vmatmul.mubr.bf16.vlgmr.msra.gmra.mxu0 %v385_v31 }
  0x2e   : > { %1525 = vmatprep.mubr.msk.bf16.mxu1 %vm1691_vm0, %v1689_v2  ;;  %1549 = vmatprep.mubr.msk.bf16.mxu0 %vm1691_vm0, %v1689_v2 }
  0xed   : > { %v642_v36 = vpop.f32.mrf.mxu1  ;;  %v491_v38 = vpop.f32.mrf.mxu0 }
  0xee   : > { %v643_v42 = vadd.f32 %v642_v36, %v521_v37  ;;  %v492_v52 = vadd.f32 %v1420_v48, %v491_v38 }
  0xef   : > { %v644_v39 = vpop.f32.mrf.mxu1  ;;  %v1521_v40 = vpop.f32.mrf.mxu0 }
  0xf0   : > { %v645_v55 = vadd.f32 %v644_v39, %v525_v51 }
  0xf1   : > { %v646_v41 = vpop.f32.mrf.mxu1  ;;  %v494_v44 = vpop.f32.mrf.mxu0 }
  0xf2   : > { %v647_v43 = vadd.f32 %v646_v41, %v521_v37  ;;  %v495_v53 = vadd.f32 %v1420_v48, %v494_v44 }
  0xf3   : > { %v1522_v47 = vpop.f32.mrf.mxu0  ;;  %v648_v49 = vpop.f32.mrf.mxu1 }
  0xf4   : > { %v651_v46 = vpack.c.bf16 %v647_v43, %v643_v42  ;;  %v649_v54 = vadd.f32 %v648_v49, %v525_v51  ;;  %v498_v56 = vpack.c.bf16 %v495_v53, %v492_v52 }
  0xf6   : > { %v658_v50 = vsel %vm653_vm1, %v651_v46, 0  ;;  %v1874_v57 = vpack.c.bf16 %v649_v54, %v645_v55 }
  0xf7   : > { %1524 = vmatpush3.bf16.xpose.msra.mxu1 %v658_v50 }
  0xf8   : > { %1529 = vmatprep.subr.bf16.mxu1 %v1689_v2 }
  0xfe   : > { %1526 = vmatmul.mubr.msk.bf16.vlgmr.msra.gmra.mxu1 %vm653_vm1, %v498_v56 }
  0xff   : > { %1530 = vmatpush3.bf16.msra.mxu1 %v1874_v57  ;;  %1531 = vmatprep.mubr.msk.bf16.mxu1 %vm1691_vm0, %v1689_v2 }
 0x100   : > { %1535 = vmatprep.subr.bf16.mxu1 %v1689_v2 }
 0x1be   : > { %v694_v58 = vpop.f32.mrf.mxu1 }
 0x1bf   : > { %v701_v59 = vmul.f32 0.17677669, %v694_v58 }
 0x1c0   : > { %v1527_v60 = vpop.f32.mrf.mxu1 }
 0x1c1   : > { %v704_v61 = vsel %vm703_vm2, %v701_v59, -inf }
 0x1c2   : > { %705 = vmax.xlane.f32.xlu0 %v704_v61  ;;  %v697_v62 = vpop.f32.mrf.mxu1 }
 0x1c3   : > { %v702_v63 = vmul.f32 0.17677669, %v697_v62 }
 0x1c4   : > { %v1528_v0 = vpop.f32.mrf.mxu1 }
 0x1c5   : > { %v707_v1 = vsel %vm703_vm2, %v702_v63, -inf }
 0x1c6   : > { %708 = vmax.xlane.f32.xlu0 %v707_v1 }
 0x1dc   : > { %777 = vrot.lane.b32.xlu0 %v651_v46, %s1692_s20 }
 0x1e0   : > { %1046 = vrot.lane.b32.xlu0 %v651_v46, %s1693_s21 }
 0x24b   : > { %v706_v3 = vpop.xlane.xlu0 %705 }
 0x24c   : > { %v710_v4 = vsub.f32 %v701_v59, %v706_v3 }
 0x24e   : > { %v712_v5 = vmul.f32 1.442695, %v710_v4 }
 0x24f   : > { %v709_v6 = vpop.xlane.xlu0 %708 }
 0x250   : > { %1645 = vpow2.f32 %v712_v5  ;;  %v711_v7 = vsub.f32 %v702_v63, %v709_v6 }
 0x252   : > { %v714_v8 = vmul.f32 1.442695, %v711_v7 }
 0x253   : > { %v778_v16 = vpop.permute.xlu0 %777 }
 0x254   : > { %1647 = vpow2.f32 %v714_v8  ;;  %v783_v27 = vsel %vm653_vm1, %v778_v16, 0 }
 0x257   : > { %v1047_v21 = vpop.permute.xlu0 %1046 }
 0x258   : > { %v1052_v25 = vsel %vm653_vm1, %v1047_v21, 0 }
 0x25d   : > { %v1646_v9 = vpop.eup %1645 }
 0x25e   : > { %v716_v10 = vsel %vm703_vm2, %v1646_v9, 0.0 }
 0x25f   : > { %717 = vadd.xlane.f32.xlu1 %v716_v10 }
 0x261   : > { %v1648_v11 = vpop.eup %1647 }
 0x262   : > { %v719_v12 = vsel %vm703_vm2, %v1648_v11, 0.0 }
 0x263   : > { %720 = vadd.xlane.f32.xlu1 %v719_v12 }
 0x274   : > { %774 = vrot.lane.b32.xlu1 %v498_v56, %s1692_s20 }
 0x278   : > { %912 = vrot.lane.b32.xlu1 %v651_v46, %s1694_s14 }
 0x27c   : > { %910 = vrot.lane.b32.xlu1 %v498_v56, %s1694_s14 }
 0x280   : > { %1044 = vrot.lane.b32.xlu1 %v498_v56, %s1693_s21 }
 0x2e8   : > { %v718_v13 = vpop.xlane.xlu1 %717 }
 0x2e9   : > { %1649 = vrcp.f32 %v718_v13 }
 0x2ec   : > { %v721_v14 = vpop.xlane.xlu1 %720 }
 0x2ed   : > { %1651 = vrcp.f32 %v721_v14 }
 0x2f0   : > { %v775_v15 = vpop.permute.xlu1 %774 }
 0x2f4   : > { %v913_v17 = vpop.permute.xlu1 %912 }
 0x2f5   : > { %v918_v18 = vsel %vm653_vm1, %v913_v17, 0 }
 0x2f6   : > { %1548 = vmatpush3.bf16.xpose.msra.mxu0 %v918_v18  ;;  %v1650_v19 = vpop.eup %1649 }
 0x2f7   : > { %1559 = vmatprep.subr.bf16.mxu0 %v1689_v2  ;;  %v724_v22 = vmul.f32 %v1650_v19, %v1646_v9 }
 0x2f8   : > { %v911_v24 = vpop.permute.xlu1 %910 }
 0x2fa   : > { %v1652_v20 = vpop.eup %1651 }
 0x2fb   : > { %v725_v23 = vmul.f32 %v1652_v20, %v1648_v11 }
 0x2fc   : > { %v1045_v30 = vpop.permute.xlu1 %1044 }
 0x2fd   : > { %1550 = vmatmul.mubr.msk.bf16.vlgmr.msra.gmra.mxu0 %vm653_vm1, %v911_v24  ;;  %v726_v26 = vpack.c.bf16 %v725_v23, %v724_v22 }
 0x2fe   : > { %1560 = vmatpush3.bf16.xpose.msra.mxu0 %v1052_v25  ;;  %1561 = vmatprep.mubr.msk.bf16.mxu0 %vm1691_vm0, %v1689_v2 }
 0x2ff   : > { %1532 = vmatmul.mubr.msk.bf16.vlgmr.msra.gmra.mxu1 %vm703_vm2, %v726_v26  ;;  %1571 = vmatprep.subr.bf16.mxu0 %v1689_v2 }
 0x300   : > { %1536 = vmatpush3.bf16.xpose.msra.mxu1 %v783_v27  ;;  %1537 = vmatprep.mubr.msk.bf16.mxu1 %vm1691_vm0, %v1689_v2 }
 0x301   : > { %1541 = vmatprep.subr.bf16.mxu1 %v1689_v2 }
 0x305   : > { %1562 = vmatmul.mubr.msk.bf16.vlgmr.msra.gmra.mxu0 %vm653_vm1, %v1045_v30 }
 0x306   : > { %1587 = vmatprep.mubr.msk.bf16.mxu0 %vm1691_vm0, %v1689_v2 }
 0x307   : > { %1538 = vmatmul.mubr.msk.bf16.vlgmr.msra.gmra.mxu1 %vm653_vm1, %v775_v15 }
 0x308   : > { %1543 = vmatprep.mubr.msk.bf16.mxu1 %vm1691_vm0, %v1689_v2 }
 0x3bd   : > { %v954_v31 = vpop.f32.mrf.mxu0 }
 0x3be   : > { %v961_v45 = vmul.f32 0.17677669, %v954_v31 }
 0x3bf   : > { %v764_v32 = vpop.f32.mrf.mxu1  ;;  %v1551_v33 = vpop.f32.mrf.mxu0 }
 0x3c0   : > { %771 = vst.msk [vmem:[#allocation2] sm:$0xff] %vm653_vm1, %v764_v32  ;;  %v963_v54 = vsel %vm703_vm2, %v961_v45, -inf }
 0x3c1   : > { %v1533_v34 = vpop.f32.mrf.mxu1  ;;  %v957_v35 = vpop.f32.mrf.mxu0 }
 0x3c2   : > { %v962_v51 = vmul.f32 0.17677669, %v957_v35 }
 0x3c3   : > { %v767_v36 = vpop.f32.mrf.mxu1  ;;  %v1552_v37 = vpop.f32.mrf.mxu0 }
 0x3c4   : > { %772 = vst.msk [vmem:[#allocation2 + $0x8] sm:$0xff] %vm653_vm1, %v767_v36  ;;  %v966_v56 = vsel %vm703_vm2, %v962_v51, -inf }
 0x3c5   : > { %v1534_v38 = vpop.f32.mrf.mxu1  ;;  %v1088_v39 = vpop.f32.mrf.mxu0 }
 0x3c6   : > { %v1095_v55 = vmul.f32 0.17677669, %v1088_v39 }
 0x3c7   : > { %v819_v40 = vpop.f32.mrf.mxu1  ;;  %v1563_v41 = vpop.f32.mrf.mxu0 }
 0x3c8   : > { %v826_v42 = vmul.f32 0.17677669, %v819_v40  ;;  %v1097_v59 = vsel %vm703_vm2, %v1095_v55, -inf }
 0x3c9   : > { %v1539_v43 = vpop.f32.mrf.mxu1  ;;  %v1091_v44 = vpop.f32.mrf.mxu0 }
 0x3ca   : > { %v828_v46 = vsel %vm703_vm2, %v826_v42, -inf  ;;  %v1096_v52 = vmul.f32 0.17677669, %v1091_v44 }
 0x3cb   : > { %829 = vmax.xlane.f32.xlu0 %v828_v46  ;;  %v822_v47 = vpop.f32.mrf.mxu1  ;;  %v1564_v48 = vpop.f32.mrf.mxu0 }
 0x3cc   : > { %v827_v49 = vmul.f32 0.17677669, %v822_v47  ;;  %v1100_v58 = vsel %vm703_vm2, %v1096_v52, -inf }
 0x3cd   : > { %v1540_v50 = vpop.f32.mrf.mxu1 }
 0x3ce   : > { %v831_v53 = vsel %vm703_vm2, %v827_v49, -inf }
 0x3cf   : > { %832 = vmax.xlane.f32.xlu1 %v831_v53  ;;  %964 = vmax.xlane.f32.xlu0 %v963_v54  ;;  %v1638_v53 = vld [vmem:[%s1999_s6 + $0x30] sm:$0xff]   ;;  %v1639_v54 = vld [vmem:[%s1999_s6 + $0x28] sm:$0xff]  }
 0x3d3   : > { %967 = vmax.xlane.f32.xlu0 %v966_v56  ;;  %1101 = vmax.xlane.f32.xlu1 %v1100_v58  ;;  %v1641_v58 = vld [vmem:[%s1999_s6 + $0x18] sm:$0xff]  }
 0x3d7   : > { %1098 = vmax.xlane.f32.xlu0 %v1097_v59 }
 0x454   : > { %v830_v60 = vpop.xlane.xlu0 %829 }
 0x455   : > { %v834_v6 = vsub.f32 %v826_v42, %v830_v60 }
 0x457   : > { %v836_v12 = vmul.f32 1.442695, %v834_v6 }
 0x458   : > { %v833_v61 = vpop.xlane.xlu1 %832  ;;  %v965_v62 = vpop.xlane.xlu0 %964 }
 0x459   : > { %v969_v63 = vsub.f32 %v961_v45, %v965_v62  ;;  %v835_v7 = vsub.f32 %v827_v49, %v833_v61  ;;  %v1642_v61 = vld [vmem:[%s1999_s6 + $0x10] sm:$0xff]  }
 0x45b   : > { %v971_v0 = vmul.f32 1.442695, %v969_v63  ;;  %v838_v13 = vmul.f32 1.442695, %v835_v7 }
 0x45c   : > { %v968_v1 = vpop.xlane.xlu0 %967  ;;  %v1102_v3 = vpop.xlane.xlu1 %1101 }
 0x45d   : > { %v970_v4 = vsub.f32 %v962_v51, %v968_v1  ;;  %v1104_v5 = vsub.f32 %v1096_v52, %v1102_v3  ;;  %1653 = vpow2.f32 %v971_v0  ;;  %v1637_v52 = vld [vmem:[%s1999_s6 + $0x38] sm:$0xff]   ;;  %v1643_v0 = vld [vmem:[%s1999_s6 + $0x8] sm:$0xff]   ;;  %v1644_v3 = vld [vmem:[%s1999_s6] sm:$0xff]  }
 0x45e   : > { %1572 = vmatpush3.bf16.msra.mxu0 %v1637_v52 }
 0x45f   : > { %v973_v8 = vmul.f32 1.442695, %v970_v4  ;;  %v1107_v9 = vmul.f32 1.442695, %v1104_v5  ;;  %1573 = vmatprep.subr.bf16.mxu0 %v1689_v2 }
 0x460   : > { %v1099_v10 = vpop.xlane.xlu0 %1098 }
 0x461   : > { %1655 = vpow2.f32 %v973_v8  ;;  %v1103_v11 = vsub.f32 %v1095_v55, %v1099_v10  ;;  %v1640_v55 = vld [vmem:[%s1999_s6 + $0x20] sm:$0xff]  }
 0x462   : > { %1657 = vpow2.f32 %v1107_v9  ;;  %1574 = vmatpush3.bf16.msra.mxu0 %v1638_v53 }
 0x463   : > { %v1105_v14 = vmul.f32 1.442695, %v1103_v11  ;;  %1575 = vmatprep.subr.bf16.mxu0 %v1689_v2 }
 0x465   : > { %1659 = vpow2.f32 %v1105_v14 }
 0x466   : > { %1661 = vpow2.f32 %v836_v12  ;;  %1576 = vmatpush3.bf16.msra.mxu0 %v1639_v54 }
 0x467   : > { %1663 = vpow2.f32 %v838_v13  ;;  %1577 = vmatprep.subr.bf16.mxu0 %v1689_v2 }
 0x46a   : > { %v1654_v15 = vpop.eup %1653  ;;  %1578 = vmatpush3.bf16.msra.mxu0 %v1640_v55 }
 0x46b   : > { %v975_v16 = vsel %vm703_vm2, %v1654_v15, 0.0  ;;  %1579 = vmatprep.subr.bf16.mxu0 %v1689_v2 }
 0x46c   : > { %976 = vadd.xlane.f32.xlu0 %v975_v16 }
 0x46e   : > { %v1656_v17 = vpop.eup %1655  ;;  %1580 = vmatpush3.bf16.msra.mxu0 %v1641_v58 }
 0x46f   : > { %v978_v18 = vsel %vm703_vm2, %v1656_v17, 0.0  ;;  %v1658_v19 = vpop.eup %1657  ;;  %1581 = vmatprep.subr.bf16.mxu0 %v1689_v2 }
 0x470   : > { %979 = vadd.xlane.f32.xlu1 %v978_v18  ;;  %v1112_v23 = vsel %vm703_vm2, %v1658_v19, 0.0  ;;  %v1453_v18 = vld [vmem:[%s2000_s7] ss:$0 sm:$0xff] }
 0x472   : > { %v1660_v20 = vpop.eup %1659  ;;  %1582 = vmatpush3.bf16.msra.mxu0 %v1642_v61 }
 0x473   : > { %v1662_v21 = vpop.eup %1661  ;;  %v1109_v22 = vsel %vm703_vm2, %v1660_v20, 0.0  ;;  %1583 = vmatprep.subr.bf16.mxu0 %v1689_v2 }
 0x474   : > { %v1664_v24 = vpop.eup %1663  ;;  %1110 = vadd.xlane.f32.xlu0 %v1109_v22  ;;  %1113 = vadd.xlane.f32.xlu1 %v1112_v23  ;;  %v840_v25 = vsel %vm703_vm2, %v1662_v21, 0.0 }
 0x475   : > { %v843_v26 = vsel %vm703_vm2, %v1664_v24, 0.0 }
 0x476   : > { %1584 = vmatpush3.bf16.msra.mxu0 %v1643_v0 }
 0x477   : > { %1585 = vmatprep.subr.bf16.mxu0 %v1689_v2 }
 0x478   : > { %841 = vadd.xlane.f32.xlu0 %v840_v25  ;;  %844 = vadd.xlane.f32.xlu1 %v843_v26 }
 0x47a   : > { %1586 = vmatpush3.bf16.msra.mxu0 %v1644_v3 }
 0x489   : > { %986 = vrot.lane.b32.xlu1 %v1874_v57, %s1694_s14 }
 0x48d   : > { %1120 = vrot.lane.b32.xlu1 %v1874_v57, %s1693_s21 }
 0x48e   : > { %852 = vrot.lane.b32.xlu0 %v1874_v57, %s1692_s20 }
 0x4f5   : > { %v977_v27 = vpop.xlane.xlu0 %976 }
 0x4f9   : > { %v980_v30 = vpop.xlane.xlu1 %979 }
 0x4fd   : > { %v1111_v31 = vpop.xlane.xlu0 %1110  ;;  %v1114_v32 = vpop.xlane.xlu1 %1113 }
 0x501   : > { %v842_v33 = vpop.xlane.xlu0 %841  ;;  %v845_v34 = vpop.xlane.xlu1 %844 }
 0x502   : > { %1665 = vrcp.f32 %v842_v33 }
 0x503   : > { %1667 = vrcp.f32 %v845_v34 }
 0x504   : > { %1669 = vrcp.f32 %v980_v30 }
 0x505   : > { %v853_v35 = vpop.permute.xlu0 %852  ;;  %1671 = vrcp.f32 %v977_v27  ;;  %v987_v41 = vpop.permute.xlu1 %986 }
 0x506   : > { %1542 = vmatpush3.bf16.msra.mxu1 %v853_v35  ;;  %1673 = vrcp.f32 %v1111_v31 }
 0x507   : > { %1553 = vmatprep.subr.bf16.mxu1 %v1689_v2  ;;  %1675 = vrcp.f32 %v1114_v32 }
 0x509   : > { %v1121_v48 = vpop.permute.xlu1 %1120 }
 0x50f   : > { %v1666_v36 = vpop.eup %1665 }
 0x510   : > { %v1668_v37 = vpop.eup %1667  ;;  %v848_v38 = vmul.f32 %v1666_v36, %v1662_v21 }
 0x511   : > { %v849_v57 = vmul.f32 %v1668_v37, %v1664_v24  ;;  %v1670_v40 = vpop.eup %1669 }
 0x512   : > { %v1672_v42 = vpop.eup %1671  ;;  %v984_v43 = vmul.f32 %v1670_v40, %v1656_v17 }
 0x513   : > { %v850_v39 = vpack.c.bf16 %v849_v57, %v848_v38  ;;  %v983_v44 = vmul.f32 %v1672_v42, %v1654_v15  ;;  %v1674_v45 = vpop.eup %1673 }
 0x514   : > { %v1676_v47 = vpop.eup %1675  ;;  %v1117_v49 = vmul.f32 %v1674_v45, %v1660_v20 }
 0x515   : > { %1544 = vmatmul.mubr.msk.bf16.vlgmr.msra.gmra.mxu1 %vm703_vm2, %v850_v39  ;;  %v985_v46 = vpack.c.bf16 %v984_v43, %v983_v44  ;;  %v1118_v50 = vmul.f32 %v1676_v47, %v1658_v19  ;;  %v1462_v44 = vld [vmem:[%s2001_s8] ss:$0 sm:$0xff] }
 0x516   : > { %1554 = vmatpush3.bf16.msra.mxu1 %v987_v41  ;;  %1555 = vmatprep.mubr.msk.bf16.mxu1 %vm1691_vm0, %v1689_v2 }
 0x517   : > { %1565 = vmatprep.subr.bf16.mxu1 %v1689_v2  ;;  %v1119_v51 = vpack.c.bf16 %v1118_v50, %v1117_v49 }
 0x51d   : > { %1556 = vmatmul.mubr.msk.bf16.vlgmr.msra.gmra.mxu1 %vm703_vm2, %v985_v46  ;;  %v1463_v46 = vld [vmem:[%s2002_s9] ss:$0 sm:$0xff] }
 0x51e   : > { %1566 = vmatpush3.bf16.msra.mxu1 %v1121_v48  ;;  %1567 = vmatprep.mubr.msk.bf16.mxu1 %vm1691_vm0, %v1689_v2 }
 0x525   : > { %1568 = vmatmul.mubr.msk.bf16.vlgmr.msra.gmra.mxu1 %vm703_vm2, %v1119_v51 }
 0x5d5   : > { %v892_v56 = vpop.f32.mrf.mxu1 }
 0x5d6   : > { %901 = vrot.lane.b32.xlu1 %v892_v56, %s1693_s21 }
 0x5d7   : > { %v1545_v59 = vpop.f32.mrf.mxu1 }
 0x5d9   : > { %v895_v60 = vpop.f32.mrf.mxu1 }
 0x5da   : > { %903 = vrot.lane.b32.xlu0 %v895_v60, %s1693_s21 }
 0x5db   : > { %v1546_v62 = vpop.f32.mrf.mxu1 }
 0x5dd   : > { %v1026_v63 = vpop.f32.mrf.mxu1 }
 0x5de   : > { %1035 = vrot.lane.b32.xlu1 %v1026_v63, %s1694_s14 }
 0x5df   : > { %v1557_v1 = vpop.f32.mrf.mxu1 }
 0x5e1   : > { %v1029_v4 = vpop.f32.mrf.mxu1 }
 0x5e2   : > { %1037 = vrot.lane.b32.xlu0 %v1029_v4, %s1694_s14 }
 0x5e3   : > { %v1558_v5 = vpop.f32.mrf.mxu1 }
 0x5e5   : > { %v1160_v6 = vpop.f32.mrf.mxu1 }
 0x5e6   : > { %1169 = vrot.lane.b32.xlu1 %v1160_v6, %s1692_s20 }
 0x5e7   : > { %v1569_v7 = vpop.f32.mrf.mxu1 }
 0x5e9   : > { %v1163_v8 = vpop.f32.mrf.mxu1 }
 0x5ea   : > { %1171 = vrot.lane.b32.xlu0 %v1163_v8, %s1692_s20 }
 0x5eb   : > { %v1570_v9 = vpop.f32.mrf.mxu1 }
 0x648   : > { %v902_v10 = vpop.permute.xlu1 %901 }
 0x649   : > { %908 = vst.msk [vmem:[#allocation2] sm:$0xff] %vm907_vm3, %v902_v10 }
 0x64c   : > { %v904_v11 = vpop.permute.xlu0 %903 }
 0x64d   : > { %909 = vst.msk [vmem:[#allocation2 + $0x8] sm:$0xff] %vm907_vm3, %v904_v11 }
 0x650   : > { %v1036_v2 = vpop.permute.xlu1 %1035 }
 0x651   : > { %1042 = vst.msk [vmem:[#allocation2] sm:$0xff] %vm1041_vm4, %v1036_v2 }
 0x654   : > { %v1038_v12 = vpop.permute.xlu0 %1037 }
 0x655   : > { %1043 = vst.msk [vmem:[#allocation2 + $0x8] sm:$0xff] %vm1041_vm4, %v1038_v12 }
 0x658   : > { %v1170_v13 = vpop.permute.xlu1 %1169 }
 0x659   : > { %1176 = vst.msk [vmem:[#allocation2] sm:$0xff] %vm1175_vm5, %v1170_v13 }
 0x65c   : > { %v1172_v14 = vpop.permute.xlu0 %1171 }
 0x65d   : > { %1177 = vst.msk [vmem:[#allocation2 + $0x8] sm:$0xff] %vm1175_vm5, %v1172_v14 }
 0x660   : > { %v1178_v15 = vld [vmem:[#allocation2] sm:$0xff] }
 0x664   : > { %v1179_v16 = vld [vmem:[#allocation2 + $0x8] sm:$0xff] }
 0x665   : > { %v1180_v17 = vpack.c.bf16 %v1179_v16, %v1178_v15 }
 0x667   : > { %1588 = vmatmul.mubr.bf16.vlgmr.msra.gmra.mxu0 %v1180_v17 }
 0x727   : > { %v1286_v19 = vpop.f32.mrf.mxu0 }
 0x728   : > { %v1287_v20 = vadd.f32 %v1453_v18, %v1286_v19 }
 0x729   : > { %v1589_v21 = vpop.f32.mrf.mxu0 }
 0x72a   : > { %v1293_v22 = vadd.f32 %v1287_v20, %v1853_v28 }
 0x72b   : > { %v1289_v23 = vpop.f32.mrf.mxu0 }
 0x72c   : > { %v1290_v24 = vadd.f32 %v1453_v18, %v1289_v23  ;;  %1295 = vadd.xlane.f32.xlu1 %v1293_v22  ;;  %v1302_v25 = vmul.f32 %v1293_v22, %v1293_v22 }
 0x72d   : > { %v1590_v26 = vpop.f32.mrf.mxu0 }
 0x72e   : > { %1304 = vadd.xlane.f32.xlu0 %v1302_v25  ;;  %v1294_v27 = vadd.f32 %v1290_v24, %v1855_v29 }
 0x730   : > { %v1303_v30 = vmul.f32 %v1294_v27, %v1294_v27 }
 0x732   : > { %1297 = vadd.xlane.f32.xlu0 %v1294_v27 }
 0x736   : > { %1306 = vadd.xlane.f32.xlu0 %v1303_v30 }
 0x7b5   : > { %v1296_v31 = vpop.xlane.xlu1 %1295 }
 0x7b6   : > { %v1300_v32 = vmul.f32 0.0078125, %v1296_v31 }
 0x7b7   : > { %v1305_v33 = vpop.xlane.xlu0 %1304 }
 0x7b8   : > { %v1310_v34 = vmul.f32 %v1300_v32, %v1300_v32  ;;  %v1308_v35 = vmul.f32 0.0078125, %v1305_v33  ;;  %v1314_v29 = vsub.f32 %v1293_v22, %v1300_v32 }
 0x7ba   : > { %v1312_v36 = vsub.f32 %v1308_v35, %v1310_v34 }
 0x7bb   : > { %v1298_v37 = vpop.xlane.xlu0 %1297 }
 0x7bc   : > { %v1316_v28 = vadd.f32 1e-06, %v1312_v36  ;;  %v1301_v38 = vmul.f32 0.0078125, %v1298_v37 }
 0x7be   : > { %1677 = vrsqrt.f32 %v1316_v28  ;;  %v1311_v39 = vmul.f32 %v1301_v38, %v1301_v38  ;;  %v1315_v49 = vsub.f32 %v1294_v27, %v1301_v38 }
 0x7bf   : > { %v1307_v57 = vpop.xlane.xlu0 %1306 }
 0x7c0   : > { %v1309_v40 = vmul.f32 0.0078125, %v1307_v57 }
 0x7c2   : > { %v1313_v41 = vsub.f32 %v1309_v40, %v1311_v39 }
 0x7c4   : > { %v1317_v42 = vadd.f32 1e-06, %v1313_v41 }
 0x7c6   : > { %1679 = vrsqrt.f32 %v1317_v42 }
 0x7cb   : > { %v1678_v43 = vpop.eup %1677 }
 0x7cc   : > { %v1320_v45 = vmul.f32 %v1678_v43, %v1314_v29 }
 0x7ce   : > { %v1329_v47 = vmul.f32 %v1462_v44, %v1320_v45 }
 0x7d0   : > { %v1338_v48 = vadd.f32 %v1463_v46, %v1329_v47 }
 0x7d2   : > { %1340 = vst [vmem:[%s379_s28] sm:$0xff] %v1338_v48 }
 0x7d3   : > { %v1680_v50 = vpop.eup %1679 }
 0x7d4   : > { %v1321_v51 = vmul.f32 %v1680_v50, %v1315_v49 }
 0x7d6   : > { %v1330_v52 = vmul.f32 %v1462_v44, %v1321_v51 }
 0x7d8   : > { %v1339_v53 = vadd.f32 %v1463_v46, %v1330_v52 }
 0x7da   : > { %1341 = vst [vmem:[%s379_s28 + $0x8] sm:$0xff] %v1339_v53 }
 0x7db PF: > { %s20_s13 = sadd.s32 1, %s1687_s13  }
 0x7dc   : > { %p17_p4 = scmp.ge.s32.totalorder %s20_s13, 4  }
 0x7de   :  { %19 = sbr.rel (!%p17_p4) target bundleno = 1 (0x1), region = 93 }

</bundles_post_ra>
